<compile_context>
chip_gen: v5e
topology: v5e:2x2
jax: 0.10.0
libtpu: 0.0.40
codegen_flags: <defaults>
</compile_context>

<pallas_src>
import jax
import jax.numpy as jnp
from jax.experimental import pallas as pl
from jax.experimental.pallas import tpu as pltpu


_FAST_PATH_VMEM_BUDGET = 12 * 1024 * 1024   # bytes; conservative for v5e's 16 MiB scoped default
_TM_MAX = 512     # row-tile cap (multiple of 8)
_TN_MAX = 512     # col-tile cap (multiple of 128)
_TK_MAX = 1024    # reduction-tile cap (multiple of 128)


def _round_up(x, m):
    return x + (-x) % m


# --------------------------------- kernels --------------------------------- #

def _linear_single_block_kernel(x_ref, w_ref, b_ref, o_ref):
    """Whole problem resident in VMEM: one MXU matmul + bias, one store."""
    acc = jnp.dot(x_ref[...], w_ref[...], preferred_element_type=jnp.float32)
    o_ref[...] = (acc + b_ref[...].astype(jnp.float32)).astype(o_ref.dtype)


def _linear_kernel_accum_out(x_ref, w_ref, b_ref, o_ref):
    """Tiled kernel, f32 output: accumulate directly into the resident output
    tile (out_spec ignores k) -- no scratch, no finalize copy."""
    k = pl.program_id(2)

    @pl.when(k == 0)
    def _init():
        o_ref[...] = jnp.broadcast_to(b_ref[...].astype(jnp.float32), o_ref.shape)

    o_ref[...] += jnp.dot(x_ref[...], w_ref[...],
                          preferred_element_type=jnp.float32)


def _linear_kernel_scratch(x_ref, w_ref, b_ref, o_ref, acc_ref):
    """Tiled kernel for non-f32 outputs: f32 VMEM accumulator, cast on finalize."""
    k = pl.program_id(2)

    @pl.when(k == 0)
    def _init():
        acc_ref[...] = jnp.broadcast_to(b_ref[...].astype(jnp.float32), acc_ref.shape)

    acc_ref[...] += jnp.dot(x_ref[...], w_ref[...],
                            preferred_element_type=jnp.float32)

    @pl.when(k == pl.num_programs(2) - 1)
    def _finalize():
        o_ref[...] = acc_ref[...].astype(o_ref.dtype)


# --------------------------------- wrapper --------------------------------- #

def _choose_tiling(M, K, N):
    """Full-extent blocks for small dims (no padding); capped tiles otherwise."""
    if M <= _TM_MAX:
        tm, Mp = M, M
    else:
        tm, Mp = _TM_MAX, _round_up(M, _TM_MAX)
    if K <= _TK_MAX:
        tk, Kp = K, K
    else:
        tk, Kp = _TK_MAX, _round_up(K, _TK_MAX)
    if N <= _TN_MAX:
        tn, Np = N, N
    else:
        tn, Np = _TN_MAX, _round_up(N, _TN_MAX)
    return (tm, tk, tn), (Mp, Kp, Np)


def _maybe_pad2d(x, rows, cols):
    pr, pc = rows - x.shape[0], cols - x.shape[1]
    if pr or pc:
        x = jnp.pad(x, ((0, pr), (0, pc)))
    return x


def linear_eval_forward(h, W, b, *, compute_dtype=None):
    """logits = h @ W + b.  W is (in_size, out_size) == PyTorch weight.T;
    b may be (out_size,) or (1, out_size)."""
    h = jnp.asarray(h)
    W = jnp.asarray(W)
    b = jnp.asarray(b)
    if b.ndim == 1:
        b = b[None, :]

    M, K = h.shape
    K2, N = W.shape
    assert K == K2 and b.shape == (1, N)

    out_dtype = h.dtype
    if compute_dtype is not None:   # optional accuracy/throughput trade-off (bf16 inputs, f32 accum)
        h = h.astype(compute_dtype)
        W = W.astype(compute_dtype)

    in_itemsize = jnp.dtype(h.dtype).itemsize
    out_itemsize = jnp.dtype(out_dtype).itemsize

    # -------------------------- single-block fast path ---------------------- #
    in_bytes = (M * K + K * N + N) * in_itemsize
    out_bytes = M * N * out_itemsize
    if 2 * (in_bytes + out_bytes) + M * N * 4 <= _FAST_PATH_VMEM_BUDGET:
        return pl.pallas_call(
            _linear_single_block_kernel,
            out_shape=jax.ShapeDtypeStruct((M, N), out_dtype),
            grid=(1,),
            in_specs=[
                pl.BlockSpec((M, K), lambda i: (0, 0)),
                pl.BlockSpec((K, N), lambda i: (0, 0)),
                pl.BlockSpec((1, N), lambda i: (0, 0)),
            ],
            out_specs=pl.BlockSpec((M, N), lambda i: (0, 0)),
        )(h, W, b)

    # -------------------------------- tiled path ---------------------------- #
    (tm, tk, tn), (Mp, Kp, Np) = _choose_tiling(M, K, N)
    hp = _maybe_pad2d(h, Mp, Kp)   # no-ops when dims already divide
    Wp = _maybe_pad2d(W, Kp, Np)
    bp = _maybe_pad2d(b, 1, Np)

    f32_out = jnp.dtype(out_dtype) == jnp.dtype(jnp.float32)
    kernel = _linear_kernel_accum_out if f32_out else _linear_kernel_scratch
    scratch = [] if f32_out else [pltpu.VMEM((tm, tn), jnp.float32)]

    grid = (Mp // tm, Np // tn, Kp // tk)
    cost = pl.CostEstimate(
        flops=2 * Mp * Kp * Np,
        transcendentals=0,
        bytes_accessed=(Mp * Kp + Kp * Np + Np) * in_itemsize + Mp * Np * out_itemsize,
    )

    out = pl.pallas_call(
        kernel,
        out_shape=jax.ShapeDtypeStruct((Mp, Np), out_dtype),
        grid=grid,
        in_specs=[
            pl.BlockSpec((tm, tk), lambda i, j, k: (i, k)),   # h    row/k tile
            pl.BlockSpec((tk, tn), lambda i, j, k: (k, j)),   # W    k/col tile
            pl.BlockSpec((1, tn), lambda i, j, k: (0, j)),    # bias col tile
        ],
        out_specs=pl.BlockSpec((tm, tn), lambda i, j, k: (i, j)),
        scratch_shapes=scratch,
        compiler_params=pltpu.CompilerParams(
            dimension_semantics=("parallel", "parallel", "arbitrary"),
        ),
        cost_estimate=cost,
    )(hp, Wp, bp)

    if (Mp, Np) != (M, N):
        out = out[:M, :N]
    return out


def build_params(key, in_size, out_size):
    # PyTorch nn.Linear default init: U(-1/sqrt(in_size), 1/sqrt(in_size)).
    kw, kb = jax.random.split(key)
    bound = 1.0 / (in_size ** 0.5)
    W = jax.random.uniform(kw, (in_size, out_size), jnp.float32, -bound, bound)
    b = jax.random.uniform(kb, (out_size,), jnp.float32, -bound, bound)
    return W, b


def _ref(h, W, b):
    return jnp.dot(h, W, precision=jax.lax.Precision.HIGHEST) + b


if __name__ == "__main__":
    root = jax.random.PRNGKey(0)
    k1, k2, k3 = jax.random.split(root, 3)

    # 1) Small aligned classifier-head shape -> single-block fast path
    #    (one grid step, no K loop, no padding).
    h1 = jax.random.normal(jax.random.fold_in(k1, 0), (256, 512), jnp.float32)
    W1, b1 = build_params(jax.random.fold_in(k1, 1), 512, 256)
    out1 = jax.block_until_ready(linear_eval_forward(h1, W1, b1))
    assert out1.shape == (256, 256)
    assert bool(jnp.all(jnp.isfinite(out1)))
    assert bool(jnp.allclose(out1, _ref(h1, W1, b1), atol=1e-3, rtol=1e-3))

    # 2) Tiny non-(8,128)-aligned shapes (odd batch, 8 classes, K=64) ->
    #    fast path with full-extent blocks: zero padding, zero slicing.
    h2 = jax.random.normal(jax.random.fold_in(k2, 0), (50, 64), jnp.float32)
    W2, b2 = build_params(jax.random.fold_in(k2, 1), 64, 8)
    out2 = jax.block_until_ready(linear_eval_forward(h2, W2, b2))
    assert out2.shape == (50, 8)
    assert bool(jnp.allclose(out2, _ref(h2, W2, b2), atol=1e-3, rtol=1e-3))

    # 3) Larger shape -> tiled path: grid=(1, 2, 2); whole batch in one row
    #    tile so W streams from HBM exactly once; f32 output accumulates
    #    directly into the resident output tile (no scratch, no finalize copy).
    h3 = jax.random.normal(jax.random.fold_in(k3, 0), (256, 2048), jnp.float32)
    W3, b3 = build_params(jax.random.fold_in(k3, 1), 2048, 1024)
    out3 = jax.block_until_ready(linear_eval_forward(h3, W3, b3))
    assert out3.shape == (256, 1024)
    assert bool(jnp.all(jnp.isfinite(out3)))
    assert bool(jnp.allclose(out3, _ref(h3, W3, b3), atol=2e-3, rtol=2e-3))

    print("KERNEL_OK")
</pallas_src>

<mosaic_0001>
module attributes {stable_mosaic.version = 11 : i64} {
  func.func @_linear_single_block_kernel(%arg0: i32, %arg1: memref<256x512xf32, #tpu.memory_space<vmem>>, %arg2: memref<512x256xf32, #tpu.memory_space<vmem>>, %arg3: memref<1x256xf32, #tpu.memory_space<vmem>>, %arg4: memref<256x256xf32, #tpu.memory_space<vmem>>) attributes {dimension_semantics = [#tpu.dimension_semantics<arbitrary>], iteration_bounds = array<i64: 1>, scalar_prefetch = 0 : i64, scratch_operands = 0 : i64, tpu.core_type = #tpu.core_type<tc>, window_params = [{pipeline_mode = #tpu.pipeline_mode<synchronous>, transform_indices = @transform_0, window_bounds = array<i64: 256, 512>}, {pipeline_mode = #tpu.pipeline_mode<synchronous>, transform_indices = @transform_1, window_bounds = array<i64: 512, 256>}, {pipeline_mode = #tpu.pipeline_mode<synchronous>, transform_indices = @transform_2, window_bounds = array<i64: 1, 256>}, {pipeline_mode = #tpu.pipeline_mode<synchronous>, transform_indices = @transform_3, window_bounds = array<i64: 256, 256>}]} {
    %c0 = arith.constant 0 : index
    %c0_0 = arith.constant 0 : index
    %0 = vector.load %arg1[%c0, %c0_0] : memref<256x512xf32, #tpu.memory_space<vmem>>, vector<256x512xf32>
    %c0_1 = arith.constant 0 : index
    %c0_2 = arith.constant 0 : index
    %1 = vector.load %arg2[%c0_1, %c0_2] : memref<512x256xf32, #tpu.memory_space<vmem>>, vector<512x256xf32>
    %cst = arith.constant dense<0.000000e+00> : vector<256x256xf32>
    %2 = tpu.matmul %0, %1, %cst {dimension_numbers = #tpu.dot_dimension_numbers<[1], [0], [0], [1], [0, 0, 1, 1], [], []>} : vector<256x512xf32>, vector<512x256xf32>, vector<256x256xf32> -> vector<256x256xf32>
    %c0_3 = arith.constant 0 : index
    %c0_4 = arith.constant 0 : index
    %3 = vector.load %arg3[%c0_3, %c0_4] : memref<1x256xf32, #tpu.memory_space<vmem>>, vector<1x256xf32>
    %4 = vector.broadcast %3 : vector<1x256xf32> to vector<256x256xf32>
    %5 = arith.addf %2, %4 : vector<256x256xf32>
    %c0_5 = arith.constant 0 : index
    %c0_6 = arith.constant 0 : index
    %6 = vector.load %arg4[%c0_5, %c0_6] : memref<256x256xf32, #tpu.memory_space<vmem>>, vector<256x256xf32>
    tpu.vector_store %arg4[%c0_5, %c0_6], %5 {strides = array<i32>} : memref<256x256xf32, #tpu.memory_space<vmem>>, vector<256x256xf32>,
    return
  }
  func.func @transform_0(%arg0: i32) -> (i32, i32) {
    %c0_i32 = arith.constant 0 : i32
    %c0_i32_0 = arith.constant 0 : i32
    %c0_i32_1 = arith.constant 0 : i32
    return %c0_i32, %c0_i32_0 : i32, i32
  }
  func.func @transform_1(%arg0: i32) -> (i32, i32) {
    %c0_i32 = arith.constant 0 : i32
    %c0_i32_0 = arith.constant 0 : i32
    %c0_i32_1 = arith.constant 0 : i32
    return %c0_i32, %c0_i32_0 : i32, i32
  }
  func.func @transform_2(%arg0: i32) -> (i32, i32) {
    %c0_i32 = arith.constant 0 : i32
    %c0_i32_0 = arith.constant 0 : i32
    %c0_i32_1 = arith.constant 0 : i32
    return %c0_i32, %c0_i32_0 : i32, i32
  }
  func.func @transform_3(%arg0: i32) -> (i32, i32) {
    %c0_i32 = arith.constant 0 : i32
    %c0_i32_0 = arith.constant 0 : i32
    %c0_i32_1 = arith.constant 0 : i32
    return %c0_i32, %c0_i32_0 : i32, i32
  }
}

</mosaic_0001>

<bundles_post_ra>
// kernel: tpu_custom_call.1
= control target key start
LH: loop header
LB: loop body
LE: loop exit
PB: predicated region body
PF: predicated region fallthrough
CT: control target
= control target key end

     0   :  { %8 = vsyncpa [#allocation3], 0  ;;  %s1819_s0 = inlined_call_operand.hbm [shape: f32[256,512], index: 0, kind: input, shape index: {}]   ;;  %s1820_s1 = inlined_call_operand.hbm [shape: f32[512,256], index: 1, kind: input, shape index: {}]   ;;  %s1821_s2 = inlined_call_operand.hbm [shape: f32[1,256], index: 2, kind: input, shape index: {}]   ;;  %s1822_s3 = inlined_call_operand.hbm [shape: f32[256,256], index: 3, kind: output, shape index: {}]  }
   0x1   :  { %9 = vsyncpa [#allocation6], 0  ;;  %s28_s14 = sshll.u32 %s1820_s1, 4  ;;  %s29_s14 = int_to_ptr.hbm [resolvable:$true] %s28_s14 }
   0x2   :  { %10 = vsyncpa [#allocation4], 0  ;;  %s1497_s15 = smov [#allocation5]   ;;  %s15_s19 = sshll.u32 %s1819_s0, 4  ;;  %s16_s19 = int_to_ptr.hbm [resolvable:$true] %s15_s19 }
   0x3   :  { %s30_s16 = sshll.u32 %s1497_s15, 4  ;;  %s1498_s20 = smov 256   ;;  %s31_s16 = int_to_ptr.vmem [resolvable:$true] %s30_s16 }
   0x4   :  { %s1499_s21 = smov 16   ;;  %s1500_s22 = smov [#allocation2]  }
   0x5   :  { %36 = dma.hbm_to_vmem [thread:$0]  %s29_s14, 16384, %s31_s16, [#allocation6], %s1498_s20, %s1498_s20, %s1499_s21  }
   0x6   :  { %s17_s23 = sshll.u32 %s1500_s22, 4  ;;  %s1501_s1 = smov 512   ;;  %s18_s23 = int_to_ptr.vmem [resolvable:$true] %s17_s23 }
   0x7   :  { %s1502_s24 = smov 32   ;;  %s42_s27 = sshll.u32 %s1821_s2, 4  ;;  %s43_s27 = int_to_ptr.hbm [resolvable:$true] %s42_s27 }
   0x8   :  { %23 = dma.hbm_to_vmem [thread:$0]  %s16_s19, 16384, %s18_s23, [#allocation3], %s1501_s1, %s1501_s1, %s1502_s24  }
   0x9   :  { %s1503_s28 = smov [#allocation7]  }
   0xa   :  { %s44_s0 = sshll.u32 %s1503_s28, 4  ;;  %s45_s0 = int_to_ptr.vmem [resolvable:$true] %s44_s0 }
   0xb   :  { %47 = dma.hbm_to_vmem [thread:$0]  %s43_s27, 32, %s45_s0, [#allocation6]  }
   0xc   :  { %1491 = dma.done.wait [#allocation3], 16384  }
   0xd   :  { %1492 = vsyncadd [#allocation3], 4294950912 }
   0xe   :  { %1493 = dma.done.wait [#allocation6], 16416  }
   0xf   :  { %1494 = vsyncadd [#allocation6], 4294950880  ;;  %v282_v0 = vld [vmem:[#allocation5 + $0x2f0] sm:$0xff]  ;;  %v280_v2 = vld [vmem:[#allocation5 + $0x2e0] sm:$0xff]  ;;  %s1504_s2 = smov [#allocation8]   ;;  %s1296_s5 = sshll.u32 %s1822_s3, 4  ;;  %s1297_s5 = int_to_ptr.hbm [resolvable:$true] %s1296_s5 }
  0x10   :  { %v218_v1 = vld [vmem:[#allocation5 + $0xf0] sm:$0xff]  ;;  %548 = vmatpush.msra.mxu2 %v282_v0  ;;  %v216_v4 = vld [vmem:[#allocation5 + $0xe0] sm:$0xff]  ;;  %v283_v0 = vld [vmem:[#allocation5 + $0x2f8] sm:$0xff]  ;;  %s1294_s29 = sshll.u32 %s1504_s2, 4  ;;  %s1295_s29 = int_to_ptr.vmem [resolvable:$true] %s1294_s29 }
  0x11   :  { %322 = vmatpush.msra.mxu0 %v218_v1  ;;  %v314_v3 = vld [vmem:[#allocation5 + $0x3f0] sm:$0xff]  ;;  %v312_v7 = vld [vmem:[#allocation5 + $0x3e0] sm:$0xff] }
  0x12   :  { %v250_v5 = vld [vmem:[#allocation5 + $0x1f0] sm:$0xff]  ;;  %661 = vmatpush.msra.mxu3 %v314_v3  ;;  %549 = vmatpush.msra.mxu2 %v280_v2  ;;  %v248_v9 = vld [vmem:[#allocation5 + $0x1e0] sm:$0xff]  ;;  %v63_v2 = vld [vmem:[#allocation2 + $0x18] sm:$0xff] }
  0x13   :  { %435 = vmatpush.msra.mxu1 %v250_v5  ;;  %v278_v6 = vld [vmem:[#allocation5 + $0x2d0] sm:$0xff]  ;;  %323 = vmatpush.msra.mxu0 %v216_v4  ;;  %v276_v11 = vld [vmem:[#allocation5 + $0x2c0] sm:$0xff]  ;;  %v219_v3 = vld [vmem:[#allocation5 + $0xf8] sm:$0xff] }
  0x14   :  { %v214_v8 = vld [vmem:[#allocation5 + $0xd0] sm:$0xff]  ;;  %662 = vmatpush.msra.mxu3 %v312_v7  ;;  %v212_v12 = vld [vmem:[#allocation5 + $0xc0] sm:$0xff]  ;;  %550 = vmatpush.msra.mxu2 %v278_v6  ;;  %v315_v4 = vld [vmem:[#allocation5 + $0x3f8] sm:$0xff] }
  0x15   :  { %v310_v10 = vld [vmem:[#allocation5 + $0x3d0] sm:$0xff]  ;;  %436 = vmatpush.msra.mxu1 %v248_v9  ;;  %324 = vmatpush.msra.mxu0 %v214_v8  ;;  %v308_v14 = vld [vmem:[#allocation5 + $0x3c0] sm:$0xff]  ;;  %v61_v6 = vld [vmem:[#allocation2 + $0x8] sm:$0xff] }
  0x16   :  { %v246_v13 = vld [vmem:[#allocation5 + $0x1d0] sm:$0xff]  ;;  %v244_v15 = vld [vmem:[#allocation5 + $0x1c0] sm:$0xff]  ;;  %663 = vmatpush.msra.mxu3 %v310_v10  ;;  %551 = vmatpush.msra.mxu2 %v276_v11  ;;  %v281_v7 = vld [vmem:[#allocation5 + $0x2e8] sm:$0xff] }
  0x17   :  { %437 = vmatpush.msra.mxu1 %v246_v13  ;;  %v274_v16 = vld [vmem:[#allocation5 + $0x2b0] sm:$0xff]  ;;  %325 = vmatpush.msra.mxu0 %v212_v12  ;;  %v272_v20 = vld [vmem:[#allocation5 + $0x2a0] sm:$0xff]  ;;  %v251_v8 = vld [vmem:[#allocation5 + $0x1f8] sm:$0xff] }
  0x18   :  { %v210_v17 = vld [vmem:[#allocation5 + $0xb0] sm:$0xff]  ;;  %664 = vmatpush.msra.mxu3 %v308_v14  ;;  %v208_v21 = vld [vmem:[#allocation5 + $0xa0] sm:$0xff]  ;;  %552 = vmatpush.msra.mxu2 %v274_v16  ;;  %v217_v9 = vld [vmem:[#allocation5 + $0xe8] sm:$0xff] }
  0x19   :  { %v306_v18 = vld [vmem:[#allocation5 + $0x3b0] sm:$0xff]  ;;  %438 = vmatpush.msra.mxu1 %v244_v15  ;;  %326 = vmatpush.msra.mxu0 %v210_v17  ;;  %v304_v22 = vld [vmem:[#allocation5 + $0x3a0] sm:$0xff]  ;;  %v313_v10 = vld [vmem:[#allocation5 + $0x3e8] sm:$0xff] }
  0x1a   :  { %v242_v19 = vld [vmem:[#allocation5 + $0x1b0] sm:$0xff]  ;;  %v240_v23 = vld [vmem:[#allocation5 + $0x1a0] sm:$0xff]  ;;  %665 = vmatpush.msra.mxu3 %v306_v18  ;;  %553 = vmatpush.msra.mxu2 %v272_v20  ;;  %v279_v11 = vld [vmem:[#allocation5 + $0x2d8] sm:$0xff] }
  0x1b   :  { %439 = vmatpush.msra.mxu1 %v242_v19  ;;  %v270_v24 = vld [vmem:[#allocation5 + $0x290] sm:$0xff]  ;;  %327 = vmatpush.msra.mxu0 %v208_v21  ;;  %v268_v28 = vld [vmem:[#allocation5 + $0x280] sm:$0xff]  ;;  %v249_v12 = vld [vmem:[#allocation5 + $0x1e8] sm:$0xff] }
  0x1c   :  { %v206_v25 = vld [vmem:[#allocation5 + $0x90] sm:$0xff]  ;;  %666 = vmatpush.msra.mxu3 %v304_v22  ;;  %v204_v29 = vld [vmem:[#allocation5 + $0x80] sm:$0xff]  ;;  %554 = vmatpush.msra.mxu2 %v270_v24  ;;  %v215_v13 = vld [vmem:[#allocation5 + $0xd8] sm:$0xff] }
  0x1d   :  { %v302_v26 = vld [vmem:[#allocation5 + $0x390] sm:$0xff]  ;;  %440 = vmatpush.msra.mxu1 %v240_v23  ;;  %328 = vmatpush.msra.mxu0 %v206_v25  ;;  %v300_v30 = vld [vmem:[#allocation5 + $0x380] sm:$0xff]  ;;  %v311_v15 = vld [vmem:[#allocation5 + $0x3d8] sm:$0xff] }
  0x1e   :  { %v238_v27 = vld [vmem:[#allocation5 + $0x190] sm:$0xff]  ;;  %v236_v31 = vld [vmem:[#allocation5 + $0x180] sm:$0xff]  ;;  %667 = vmatpush.msra.mxu3 %v302_v26  ;;  %555 = vmatpush.msra.mxu2 %v268_v28  ;;  %v247_v17 = vld [vmem:[#allocation5 + $0x1d8] sm:$0xff] }
  0x1f   :  { %441 = vmatpush.msra.mxu1 %v238_v27  ;;  %v266_v32 = vld [vmem:[#allocation5 + $0x270] sm:$0xff]  ;;  %329 = vmatpush.msra.mxu0 %v204_v29  ;;  %v264_v36 = vld [vmem:[#allocation5 + $0x260] sm:$0xff]  ;;  %v67_v18 = vld [vmem:[#allocation2 + $0x38] sm:$0xff] }
  0x20   :  { %v202_v33 = vld [vmem:[#allocation5 + $0x70] sm:$0xff]  ;;  %668 = vmatpush.msra.mxu3 %v300_v30  ;;  %v200_v37 = vld [vmem:[#allocation5 + $0x60] sm:$0xff]  ;;  %556 = vmatpush.msra.mxu2 %v266_v32  ;;  %v65_v19 = vld [vmem:[#allocation2 + $0x28] sm:$0xff] }
  0x21   :  { %v298_v34 = vld [vmem:[#allocation5 + $0x370] sm:$0xff]  ;;  %442 = vmatpush.msra.mxu1 %v236_v31  ;;  %330 = vmatpush.msra.mxu0 %v202_v33  ;;  %v296_v38 = vld [vmem:[#allocation5 + $0x360] sm:$0xff]  ;;  %v71_v22 = vld [vmem:[#allocation2 + $0x58] sm:$0xff] }
  0x22   :  { %v234_v35 = vld [vmem:[#allocation5 + $0x170] sm:$0xff]  ;;  %v232_v39 = vld [vmem:[#allocation5 + $0x160] sm:$0xff]  ;;  %669 = vmatpush.msra.mxu3 %v298_v34  ;;  %557 = vmatpush.msra.mxu2 %v264_v36  ;;  %v277_v23 = vld [vmem:[#allocation5 + $0x2c8] sm:$0xff] }
  0x23   :  { %443 = vmatpush.msra.mxu1 %v234_v35  ;;  %v262_v40 = vld [vmem:[#allocation5 + $0x250] sm:$0xff]  ;;  %331 = vmatpush.msra.mxu0 %v200_v37  ;;  %v260_v44 = vld [vmem:[#allocation5 + $0x240] sm:$0xff]  ;;  %v69_v24 = vld [vmem:[#allocation2 + $0x48] sm:$0xff] }
  0x24   :  { %v198_v41 = vld [vmem:[#allocation5 + $0x50] sm:$0xff]  ;;  %670 = vmatpush.msra.mxu3 %v296_v38  ;;  %v196_v45 = vld [vmem:[#allocation5 + $0x40] sm:$0xff]  ;;  %558 = vmatpush.msra.mxu2 %v262_v40  ;;  %v213_v25 = vld [vmem:[#allocation5 + $0xc8] sm:$0xff] }
  0x25   :  { %v294_v42 = vld [vmem:[#allocation5 + $0x350] sm:$0xff]  ;;  %444 = vmatpush.msra.mxu1 %v232_v39  ;;  %332 = vmatpush.msra.mxu0 %v198_v41  ;;  %v292_v46 = vld [vmem:[#allocation5 + $0x340] sm:$0xff]  ;;  %v309_v26 = vld [vmem:[#allocation5 + $0x3c8] sm:$0xff] }
  0x26   :  { %v230_v43 = vld [vmem:[#allocation5 + $0x150] sm:$0xff]  ;;  %v228_v47 = vld [vmem:[#allocation5 + $0x140] sm:$0xff]  ;;  %671 = vmatpush.msra.mxu3 %v294_v42  ;;  %559 = vmatpush.msra.mxu2 %v260_v44  ;;  %v245_v27 = vld [vmem:[#allocation5 + $0x1c8] sm:$0xff] }
  0x27   :  { %445 = vmatpush.msra.mxu1 %v230_v43  ;;  %v258_v48 = vld [vmem:[#allocation5 + $0x230] sm:$0xff]  ;;  %333 = vmatpush.msra.mxu0 %v196_v45  ;;  %v256_v52 = vld [vmem:[#allocation5 + $0x220] sm:$0xff]  ;;  %v75_v30 = vld [vmem:[#allocation2 + $0x78] sm:$0xff] }
  0x28   :  { %v194_v49 = vld [vmem:[#allocation5 + $0x30] sm:$0xff]  ;;  %672 = vmatpush.msra.mxu3 %v292_v46  ;;  %v192_v53 = vld [vmem:[#allocation5 + $0x20] sm:$0xff]  ;;  %560 = vmatpush.msra.mxu2 %v258_v48  ;;  %v73_v31 = vld [vmem:[#allocation2 + $0x68] sm:$0xff] }
  0x29   :  { %v290_v50 = vld [vmem:[#allocation5 + $0x330] sm:$0xff]  ;;  %446 = vmatpush.msra.mxu1 %v228_v47  ;;  %334 = vmatpush.msra.mxu0 %v194_v49  ;;  %v288_v54 = vld [vmem:[#allocation5 + $0x320] sm:$0xff]  ;;  %v79_v34 = vld [vmem:[#allocation2 + $0x98] sm:$0xff] }
  0x2a   :  { %v226_v51 = vld [vmem:[#allocation5 + $0x130] sm:$0xff]  ;;  %v224_v55 = vld [vmem:[#allocation5 + $0x120] sm:$0xff]  ;;  %673 = vmatpush.msra.mxu3 %v290_v50  ;;  %561 = vmatpush.msra.mxu2 %v256_v52  ;;  %v275_v35 = vld [vmem:[#allocation5 + $0x2b8] sm:$0xff] }
  0x2b   :  { %447 = vmatpush.msra.mxu1 %v226_v51  ;;  %v254_v56 = vld [vmem:[#allocation5 + $0x210] sm:$0xff]  ;;  %335 = vmatpush.msra.mxu0 %v192_v53  ;;  %v252_v60 = vld [vmem:[#allocation5 + $0x200] sm:$0xff]  ;;  %v77_v36 = vld [vmem:[#allocation2 + $0x88] sm:$0xff] }
  0x2c   :  { %v190_v57 = vld [vmem:[#allocation5 + $0x10] sm:$0xff]  ;;  %674 = vmatpush.msra.mxu3 %v288_v54  ;;  %v188_v61 = vld [vmem:[#allocation5] sm:$0xff]  ;;  %562 = vmatpush.msra.mxu2 %v254_v56  ;;  %v211_v37 = vld [vmem:[#allocation5 + $0xb8] sm:$0xff] }
  0x2d   :  { %v286_v58 = vld [vmem:[#allocation5 + $0x310] sm:$0xff]  ;;  %448 = vmatpush.msra.mxu1 %v224_v55  ;;  %336 = vmatpush.msra.mxu0 %v190_v57  ;;  %v284_v63 = vld [vmem:[#allocation5 + $0x300] sm:$0xff]  ;;  %v307_v38 = vld [vmem:[#allocation5 + $0x3b8] sm:$0xff] }
  0x2e   :  { %v222_v59 = vld [vmem:[#allocation5 + $0x110] sm:$0xff]  ;;  %675 = vmatpush.msra.mxu3 %v286_v58  ;;  %v60_v1 = vld [vmem:[#allocation2] sm:$0xff]  ;;  %563 = vmatpush.msra.mxu2 %v252_v60  ;;  %v243_v39 = vld [vmem:[#allocation5 + $0x1b8] sm:$0xff] }
  0x2f   :  { %v62_v62 = vld [vmem:[#allocation2 + $0x10] sm:$0xff]  ;;  %449 = vmatpush.msra.mxu1 %v222_v59  ;;  %337 = vmatpush.msra.mxu0 %v188_v61  ;;  %v220_v5 = vld [vmem:[#allocation5 + $0x100] sm:$0xff]  ;;  %v83_v42 = vld [vmem:[#allocation2 + $0xb8] sm:$0xff] }
  0x30   :  { %564 = vmatmul.f32.vlgmr.msra.gmra.mxu2 %v62_v62  ;;  %676 = vmatpush.msra.mxu3 %v284_v63  ;;  %v66_v14 = vld [vmem:[#allocation2 + $0x30] sm:$0xff]  ;;  %v64_v16 = vld [vmem:[#allocation2 + $0x20] sm:$0xff]  ;;  %v81_v43 = vld [vmem:[#allocation2 + $0xa8] sm:$0xff] }
  0x31   :  { %1000 = vmatpush.msrb.mxu2 %v283_v0  ;;  %338 = vmatmul.f32.vlgmr.msra.gmra.mxu0 %v60_v1  ;;  %v70_v20 = vld [vmem:[#allocation2 + $0x50] sm:$0xff]  ;;  %v68_v21 = vld [vmem:[#allocation2 + $0x40] sm:$0xff]  ;;  %v87_v46 = vld [vmem:[#allocation2 + $0xd8] sm:$0xff] }
  0x32   :  { %677 = vmatmul.f32.vlgmr.msra.gmra.mxu3 %v63_v2  ;;  %774 = vmatpush.msrb.mxu0 %v219_v3  ;;  %v74_v28 = vld [vmem:[#allocation2 + $0x70] sm:$0xff]  ;;  %v72_v29 = vld [vmem:[#allocation2 + $0x60] sm:$0xff]  ;;  %v273_v47 = vld [vmem:[#allocation5 + $0x2a8] sm:$0xff] }
  0x33   :  { %1113 = vmatpush.msrb.mxu3 %v315_v4  ;;  %450 = vmatpush.msra.mxu1 %v220_v5  ;;  %v78_v32 = vld [vmem:[#allocation2 + $0x90] sm:$0xff]  ;;  %v76_v33 = vld [vmem:[#allocation2 + $0x80] sm:$0xff]  ;;  %v85_v48 = vld [vmem:[#allocation2 + $0xc8] sm:$0xff] }
  0x34   :  { %451 = vmatmul.f32.vlgmr.msra.gmra.mxu1 %v61_v6  ;;  %1001 = vmatpush.msrb.mxu2 %v281_v7  ;;  %v82_v40 = vld [vmem:[#allocation2 + $0xb0] sm:$0xff]  ;;  %v80_v41 = vld [vmem:[#allocation2 + $0xa0] sm:$0xff]  ;;  %v209_v49 = vld [vmem:[#allocation5 + $0xa8] sm:$0xff] }
  0x35   :  { %887 = vmatpush.msrb.mxu1 %v251_v8  ;;  %775 = vmatpush.msrb.mxu0 %v217_v9  ;;  %v86_v44 = vld [vmem:[#allocation2 + $0xd0] sm:$0xff]  ;;  %v84_v45 = vld [vmem:[#allocation2 + $0xc0] sm:$0xff]  ;;  %v305_v50 = vld [vmem:[#allocation5 + $0x3a8] sm:$0xff] }
  0x36   :  { %1114 = vmatpush.msrb.mxu3 %v313_v10  ;;  %1002 = vmatpush.msrb.mxu2 %v279_v11  ;;  %v241_v51 = vld [vmem:[#allocation5 + $0x1a8] sm:$0xff]  ;;  %v90_v52 = vld [vmem:[#allocation2 + $0xf0] sm:$0xff]  ;;  %v88_v53 = vld [vmem:[#allocation2 + $0xe0] sm:$0xff] }
  0x37   :  { %888 = vmatpush.msrb.mxu1 %v249_v12  ;;  %776 = vmatpush.msrb.mxu0 %v215_v13  ;;  %v91_v54 = vld [vmem:[#allocation2 + $0xf8] sm:$0xff]  ;;  %v89_v55 = vld [vmem:[#allocation2 + $0xe8] sm:$0xff]  ;;  %v94_v56 = vld [vmem:[#allocation2 + $0x110] sm:$0xff] }
  0x38   :  { %567 = vmatmul.f32.gmra.mxu2 %v66_v14  ;;  %1115 = vmatpush.msrb.mxu3 %v311_v15  ;;  %v92_v57 = vld [vmem:[#allocation2 + $0x100] sm:$0xff]  ;;  %v95_v58 = vld [vmem:[#allocation2 + $0x118] sm:$0xff]  ;;  %v93_v60 = vld [vmem:[#allocation2 + $0x108] sm:$0xff] }
  0x39   :  { %341 = vmatmul.f32.gmra.mxu0 %v64_v16  ;;  %889 = vmatpush.msrb.mxu1 %v247_v17  ;;  %v271_v59 = vld [vmem:[#allocation5 + $0x298] sm:$0xff]  ;;  %v98_v0 = vld [vmem:[#allocation2 + $0x130] sm:$0xff]  ;;  %v96_v1 = vld [vmem:[#allocation2 + $0x120] sm:$0xff] }
  0x3a   :  { %680 = vmatmul.f32.gmra.mxu3 %v67_v18  ;;  %1003 = vmatpush.msrb.mxu2 %v277_v23  ;;  %v207_v61 = vld [vmem:[#allocation5 + $0x98] sm:$0xff]  ;;  %v97_v3 = vld [vmem:[#allocation2 + $0x128] sm:$0xff]  ;;  %v102_v4 = vld [vmem:[#allocation2 + $0x150] sm:$0xff] }
  0x3b   :  { %777 = vmatpush.msrb.mxu0 %v213_v25  ;;  %1116 = vmatpush.msrb.mxu3 %v309_v26  ;;  %v303_v62 = vld [vmem:[#allocation5 + $0x398] sm:$0xff]  ;;  %v100_v5 = vld [vmem:[#allocation2 + $0x140] sm:$0xff]  ;;  %v269_v7 = vld [vmem:[#allocation5 + $0x288] sm:$0xff] }
  0x3c   :  { %454 = vmatmul.f32.gmra.mxu1 %v65_v19  ;;  %1004 = vmatpush.msrb.mxu2 %v275_v35  ;;  %v239_v63 = vld [vmem:[#allocation5 + $0x198] sm:$0xff]  ;;  %v101_v8 = vld [vmem:[#allocation2 + $0x148] sm:$0xff]  ;;  %v106_v12 = vld [vmem:[#allocation2 + $0x170] sm:$0xff] }
  0x3d   :  { %890 = vmatpush.msrb.mxu1 %v245_v27  ;;  %778 = vmatpush.msrb.mxu0 %v211_v37  ;;  %v99_v2 = vld [vmem:[#allocation2 + $0x138] sm:$0xff]  ;;  %v205_v9 = vld [vmem:[#allocation5 + $0x88] sm:$0xff]  ;;  %v104_v13 = vld [vmem:[#allocation2 + $0x160] sm:$0xff] }
  0x3e   :  { %1117 = vmatpush.msrb.mxu3 %v307_v38  ;;  %1005 = vmatpush.msrb.mxu2 %v273_v47  ;;  %v103_v6 = vld [vmem:[#allocation2 + $0x158] sm:$0xff]  ;;  %v301_v10 = vld [vmem:[#allocation5 + $0x388] sm:$0xff]  ;;  %v110_v16 = vld [vmem:[#allocation2 + $0x190] sm:$0xff] }
  0x3f   :  { %891 = vmatpush.msrb.mxu1 %v243_v39  ;;  %779 = vmatpush.msrb.mxu0 %v209_v49  ;;  %v237_v11 = vld [vmem:[#allocation5 + $0x188] sm:$0xff]  ;;  %v107_v14 = vld [vmem:[#allocation2 + $0x178] sm:$0xff]  ;;  %v108_v17 = vld [vmem:[#allocation2 + $0x180] sm:$0xff] }
  0x40   :  { %570 = vmatmul.f32.gmra.mxu2 %v70_v20  ;;  %1118 = vmatpush.msrb.mxu3 %v305_v50  ;;  %v105_v15 = vld [vmem:[#allocation2 + $0x168] sm:$0xff]  ;;  %v111_v18 = vld [vmem:[#allocation2 + $0x198] sm:$0xff]  ;;  %v112_v25 = vld [vmem:[#allocation2 + $0x1a0] sm:$0xff] }
  0x41   :  { %344 = vmatmul.f32.gmra.mxu0 %v68_v21  ;;  %892 = vmatpush.msrb.mxu1 %v241_v51  ;;  %v267_v19 = vld [vmem:[#allocation5 + $0x278] sm:$0xff]  ;;  %v109_v20 = vld [vmem:[#allocation2 + $0x188] sm:$0xff]  ;;  %v120_v37 = vld [vmem:[#allocation2 + $0x1e0] sm:$0xff] }
  0x42   :  { %683 = vmatmul.f32.gmra.mxu3 %v71_v22  ;;  %1006 = vmatpush.msrb.mxu2 %v271_v59  ;;  %v203_v21 = vld [vmem:[#allocation5 + $0x78] sm:$0xff]  ;;  %v113_v27 = vld [vmem:[#allocation2 + $0x1a8] sm:$0xff]  ;;  %v316_v39 = vld [vmem:[#allocation7] sm:$0x3] }
  0x43   :  { %780 = vmatpush.msrb.mxu0 %v207_v61  ;;  %1119 = vmatpush.msrb.mxu3 %v303_v62  ;;  %v299_v22 = vld [vmem:[#allocation5 + $0x378] sm:$0xff]  ;;  %v233_v35 = vld [vmem:[#allocation5 + $0x168] sm:$0xff] }
  0x44   :  { %457 = vmatmul.f32.gmra.mxu1 %v69_v24  ;;  %1007 = vmatpush.msrb.mxu2 %v269_v7  ;;  %v235_v23 = vld [vmem:[#allocation5 + $0x178] sm:$0xff]  ;;  %v114_v24 = vld [vmem:[#allocation2 + $0x1b0] sm:$0xff]  ;;  %v125_v49 = vld [vmem:[#allocation2 + $0x208] sm:$0xff] }
  0x45   :  { %893 = vmatpush.msrb.mxu1 %v239_v63  ;;  %781 = vmatpush.msrb.mxu0 %v205_v9  ;;  %v115_v26 = vld [vmem:[#allocation2 + $0x1b8] sm:$0xff] }
  0x46   :  { %1120 = vmatpush.msrb.mxu3 %v301_v10  ;;  %1008 = vmatpush.msrb.mxu2 %v267_v19  ;;  %v123_v38 = vld [vmem:[#allocation2 + $0x1f8] sm:$0xff]  ;;  %v229_v19 = vld [vmem:[#allocation5 + $0x148] sm:$0xff] }
  0x47   :  { %894 = vmatpush.msrb.mxu1 %v237_v11  ;;  %782 = vmatpush.msrb.mxu0 %v203_v21  ;;  %v263_v47 = vld [vmem:[#allocation5 + $0x258] sm:$0xff]  ;;  %v261_v11 = vld [vmem:[#allocation5 + $0x248] sm:$0xff]  ;;  %v1542_v21 = vld [vmem:[#allocation2 + $0x270] sm:$0xff] }
  0x48   :  { %573 = vmatmul.f32.gmra.mxu2 %v74_v28  ;;  %1121 = vmatpush.msrb.mxu3 %v299_v22  ;;  %v118_v28 = vld [vmem:[#allocation2 + $0x1d0] sm:$0xff]  ;;  %v199_v51 = vld [vmem:[#allocation5 + $0x58] sm:$0xff] }
  0x49   :  { %347 = vmatmul.f32.gmra.mxu0 %v72_v29  ;;  %895 = vmatpush.msrb.mxu1 %v235_v23  ;;  %v116_v29 = vld [vmem:[#allocation2 + $0x1c0] sm:$0xff]  ;;  %v131_v62 = vld [vmem:[#allocation2 + $0x238] sm:$0xff] }
  0x4a   :  { %686 = vmatmul.f32.gmra.mxu3 %v75_v30  ;;  %v119_v30 = vld [vmem:[#allocation2 + $0x1d8] sm:$0xff] }
  0x4b   :  { %896 = vmatpush.msrb.mxu1 %v233_v35  ;;  %v135_v10 = vld [vmem:[#allocation2 + $0x258] sm:$0xff] }
  0x4c   :  { %460 = vmatmul.f32.gmra.mxu1 %v73_v31  ;;  %v265_v31 = vld [vmem:[#allocation5 + $0x268] sm:$0xff] }
  0x4d   :  { %1009 = vmatpush.msrb.mxu2 %v265_v31 }
  0x4f   :  { %1010 = vmatpush.msrb.mxu2 %v263_v47 }
  0x50   :  { %576 = vmatmul.f32.gmra.mxu2 %v78_v32  ;;  %v117_v32 = vld [vmem:[#allocation2 + $0x1c8] sm:$0xff] }
  0x51   :  { %350 = vmatmul.f32.gmra.mxu0 %v76_v33  ;;  %v201_v33 = vld [vmem:[#allocation5 + $0x68] sm:$0xff]  ;;  %1011 = vmatpush.msrb.mxu2 %v261_v11 }
  0x52   :  { %689 = vmatmul.f32.gmra.mxu3 %v79_v34  ;;  %v297_v34 = vld [vmem:[#allocation5 + $0x368] sm:$0xff]  ;;  %783 = vmatpush.msrb.mxu0 %v201_v33  ;;  %v1555_v33 = vld [vmem:[#allocation2 + $0x290] sm:$0xff] }
  0x53   :  { %1122 = vmatpush.msrb.mxu3 %v297_v34 }
  0x54   :  { %463 = vmatmul.f32.gmra.mxu1 %v77_v36  ;;  %v122_v36 = vld [vmem:[#allocation2 + $0x1f0] sm:$0xff]  ;;  %784 = vmatpush.msrb.mxu0 %v199_v51 }
  0x58   :  { %579 = vmatmul.f32.gmra.mxu2 %v82_v40  ;;  %v121_v40 = vld [vmem:[#allocation2 + $0x1e8] sm:$0xff] }
  0x59   :  { %353 = vmatmul.f32.gmra.mxu0 %v80_v41  ;;  %v1537_v41 = vperm.slane %v316_v39, 0  ;;  %v259_v39 = vld [vmem:[#allocation5 + $0x238] sm:$0xff] }
  0x5a   :  { %692 = vmatmul.f32.gmra.mxu3 %v83_v42  ;;  %v126_v42 = vld [vmem:[#allocation2 + $0x210] sm:$0xff]  ;;  %1012 = vmatpush.msrb.mxu2 %v259_v39  ;;  %v255_v39 = vld [vmem:[#allocation5 + $0x218] sm:$0xff] }
  0x5c   :  { %466 = vmatmul.f32.gmra.mxu1 %v81_v43 }
  0x60   :  { %582 = vmatmul.f32.gmra.mxu2 %v86_v44  ;;  %v124_v44 = vld [vmem:[#allocation2 + $0x200] sm:$0xff] }
  0x61   :  { %356 = vmatmul.f32.gmra.mxu0 %v84_v45 }
  0x62   :  { %695 = vmatmul.f32.gmra.mxu3 %v87_v46  ;;  %v127_v46 = vld [vmem:[#allocation2 + $0x218] sm:$0xff] }
  0x64   :  { %469 = vmatmul.f32.gmra.mxu1 %v85_v48 }
  0x68   :  { %585 = vmatmul.f32.gmra.mxu2 %v90_v52  ;;  %v295_v52 = vld [vmem:[#allocation5 + $0x358] sm:$0xff] }
  0x69   :  { %359 = vmatmul.f32.gmra.mxu0 %v88_v53  ;;  %1123 = vmatpush.msrb.mxu3 %v295_v52 }
  0x6a   :  { %698 = vmatmul.f32.gmra.mxu3 %v91_v54 }
  0x6c   :  { %472 = vmatmul.f32.gmra.mxu1 %v89_v55  ;;  %v231_v55 = vld [vmem:[#allocation5 + $0x158] sm:$0xff] }
  0x6d   :  { %897 = vmatpush.msrb.mxu1 %v231_v55  ;;  %v1573_v55 = vld [vmem:[#allocation2 + $0x2b8] sm:$0xff] }
  0x6f   :  { %898 = vmatpush.msrb.mxu1 %v229_v19  ;;  %v1599_v19 = vld [vmem:[#allocation2 + $0x2f8] sm:$0xff] }
  0x70   :  { %588 = vmatmul.f32.gmra.mxu2 %v94_v56 }
  0x71   :  { %362 = vmatmul.f32.gmra.mxu0 %v92_v57  ;;  %v130_v57 = vld [vmem:[#allocation2 + $0x230] sm:$0xff] }
  0x72   :  { %701 = vmatmul.f32.gmra.mxu3 %v95_v58 }
  0x74   :  { %475 = vmatmul.f32.gmra.mxu1 %v93_v60  ;;  %v128_v60 = vld [vmem:[#allocation2 + $0x220] sm:$0xff] }
  0x78   :  { %591 = vmatmul.f32.gmra.mxu2 %v98_v0  ;;  %v129_v0 = vld [vmem:[#allocation2 + $0x228] sm:$0xff] }
  0x79   :  { %365 = vmatmul.f32.gmra.mxu0 %v96_v1 }
  0x7a   :  { %704 = vmatmul.f32.gmra.mxu3 %v99_v2 }
  0x7c   :  { %478 = vmatmul.f32.gmra.mxu1 %v97_v3 }
  0x80   :  { %594 = vmatmul.f32.gmra.mxu2 %v102_v4 }
  0x81   :  { %368 = vmatmul.f32.gmra.mxu0 %v100_v5  ;;  %v134_v5 = vld [vmem:[#allocation2 + $0x250] sm:$0xff] }
  0x82   :  { %707 = vmatmul.f32.gmra.mxu3 %v103_v6 }
  0x84   :  { %481 = vmatmul.f32.gmra.mxu1 %v101_v8  ;;  %v132_v8 = vld [vmem:[#allocation2 + $0x240] sm:$0xff] }
  0x88   :  { %597 = vmatmul.f32.gmra.mxu2 %v106_v12 }
  0x89   :  { %371 = vmatmul.f32.gmra.mxu0 %v104_v13  ;;  %v133_v13 = vld [vmem:[#allocation2 + $0x248] sm:$0xff] }
  0x8a   :  { %710 = vmatmul.f32.gmra.mxu3 %v107_v14 }
  0x8c   :  { %484 = vmatmul.f32.gmra.mxu1 %v105_v15  ;;  %v197_v15 = vld [vmem:[#allocation5 + $0x48] sm:$0xff] }
  0x8d   :  { %785 = vmatpush.msrb.mxu0 %v197_v15 }
  0x90   :  { %600 = vmatmul.f32.gmra.mxu2 %v110_v16  ;;  %v293_v16 = vld [vmem:[#allocation5 + $0x348] sm:$0xff] }
  0x91   :  { %374 = vmatmul.f32.gmra.mxu0 %v108_v17  ;;  %1124 = vmatpush.msrb.mxu3 %v293_v16 }
  0x92   :  { %713 = vmatmul.f32.gmra.mxu3 %v111_v18 }
  0x94   :  { %487 = vmatmul.f32.gmra.mxu1 %v109_v20 }
  0x98   :  { %603 = vmatmul.f32.gmra.mxu2 %v114_v24  ;;  %v1544_v24 = vld [vmem:[#allocation2 + $0x260] sm:$0xff] }
  0x99   :  { %377 = vmatmul.f32.gmra.mxu0 %v112_v25 }
  0x9a   :  { %716 = vmatmul.f32.gmra.mxu3 %v115_v26  ;;  %v1547_v26 = vld [vmem:[#allocation2 + $0x278] sm:$0xff] }
  0x9c   :  { %490 = vmatmul.f32.gmra.mxu1 %v113_v27 }
  0xa0   :  { %606 = vmatmul.f32.gmra.mxu2 %v118_v28  ;;  %v1551_v28 = vld [vmem:[#allocation2 + $0x268] sm:$0xff] }
  0xa1   :  { %380 = vmatmul.f32.gmra.mxu0 %v116_v29 }
  0xa2   :  { %719 = vmatmul.f32.gmra.mxu3 %v119_v30 }
  0xa4   :  { %493 = vmatmul.f32.gmra.mxu1 %v117_v32 }
  0xa8   :  { %609 = vmatmul.f32.gmra.mxu2 %v122_v36  ;;  %v1557_v36 = vld [vmem:[#allocation2 + $0x280] sm:$0xff] }
  0xa9   :  { %383 = vmatmul.f32.gmra.mxu0 %v120_v37 }
  0xaa   :  { %722 = vmatmul.f32.gmra.mxu3 %v123_v38  ;;  %v1560_v38 = vld [vmem:[#allocation2 + $0x298] sm:$0xff] }
  0xac   :  { %496 = vmatmul.f32.gmra.mxu1 %v121_v40 }
  0xae   :  { %v339_v43 = vpop.f32.mrf.mxu0 }
  0xaf   :  { %v340_v45 = vadd.f32 %v339_v43, %v1537_v41 }
  0xb0   :  { %612 = vmatmul.f32.gmra.mxu2 %v126_v42  ;;  %v1564_v42 = vld [vmem:[#allocation2 + $0x288] sm:$0xff] }
  0xb1   :  { %v452_v48 = vpop.f32.mrf.mxu1  ;;  %386 = vmatmul.f32.gmra.mxu0 %v124_v44  ;;  %v195_v44 = vld [vmem:[#allocation5 + $0x38] sm:$0xff] }
  0xb2   :  { %v453_v50 = vadd.f32 %v452_v48, %v340_v45  ;;  %725 = vmatmul.f32.gmra.mxu3 %v127_v46  ;;  %v291_v45 = vld [vmem:[#allocation5 + $0x338] sm:$0xff]  ;;  %786 = vmatpush.msrb.mxu0 %v195_v44 }
  0xb3   :  { %v565_v53 = vpop.f32.mrf.mxu2  ;;  %1125 = vmatpush.msrb.mxu3 %v291_v45  ;;  %v227_v48 = vld [vmem:[#allocation5 + $0x138] sm:$0xff] }
  0xb4   :  { %v566_v54 = vadd.f32 %v565_v53, %v453_v50  ;;  %499 = vmatmul.f32.gmra.mxu1 %v125_v49  ;;  %v1568_v50 = vld [vmem:[#allocation2 + $0x2b0] sm:$0xff]  ;;  %v1570_v53 = vld [vmem:[#allocation2 + $0x2a0] sm:$0xff]  ;;  %v191_v45 = vld [vmem:[#allocation5 + $0x18] sm:$0xff] }
  0xb5   :  { %v678_v56 = vpop.f32.mrf.mxu3  ;;  %899 = vmatpush.msrb.mxu1 %v227_v48 }
  0xb6   :  { %v679_v58 = vadd.f32 %v678_v56, %v566_v54  ;;  %v342_v59 = vpop.f32.mrf.mxu0 }
  0xb7   :  { %v343_v61 = vadd.f32 %v342_v59, %v1537_v41 }
  0xb8   :  { %1226 = vst [vmem:[#allocation8] sm:$0xff] %v679_v58  ;;  %615 = vmatmul.f32.gmra.mxu2 %v130_v57  ;;  %v1577_v57 = vld [vmem:[#allocation2 + $0x2a8] sm:$0xff] }
  0xb9   :  { %v455_v63 = vpop.f32.mrf.mxu1  ;;  %389 = vmatmul.f32.gmra.mxu0 %v128_v60 }
  0xba   :  { %v456_v1 = vadd.f32 %v455_v63, %v343_v61  ;;  %728 = vmatmul.f32.gmra.mxu3 %v131_v62  ;;  %v1581_v62 = vld [vmem:[#allocation2 + $0x2d0] sm:$0xff] }
  0xbb   :  { %v568_v2 = vpop.f32.mrf.mxu2 }
  0xbc   :  { %v569_v3 = vadd.f32 %v568_v2, %v456_v1  ;;  %502 = vmatmul.f32.gmra.mxu1 %v129_v0  ;;  %v1583_v1 = vld [vmem:[#allocation2 + $0x2c0] sm:$0xff] }
  0xbd   :  { %v681_v4 = vpop.f32.mrf.mxu3 }
  0xbe   :  { %v682_v6 = vadd.f32 %v681_v4, %v569_v3  ;;  %v345_v7 = vpop.f32.mrf.mxu0  ;;  %v1586_v3 = vld [vmem:[#allocation2 + $0x2d8] sm:$0xff]  ;;  %v257_v4 = vld [vmem:[#allocation5 + $0x228] sm:$0xff] }
  0xbf   :  { %v346_v9 = vadd.f32 %v345_v7, %v1537_v41  ;;  %1013 = vmatpush.msrb.mxu2 %v257_v4 }
  0xc0   :  { %1228 = vst [vmem:[#allocation8 + $0x10] sm:$0xff] %v682_v6  ;;  %618 = vmatmul.f32.gmra.mxu2 %v134_v5  ;;  %v1590_v6 = vld [vmem:[#allocation2 + $0x2c8] sm:$0xff] }
  0xc1   :  { %v458_v12 = vpop.f32.mrf.mxu1  ;;  %392 = vmatmul.f32.gmra.mxu0 %v132_v8  ;;  %v193_v8 = vld [vmem:[#allocation5 + $0x28] sm:$0xff]  ;;  %1014 = vmatpush.msrb.mxu2 %v255_v39 }
  0xc2   :  { %v459_v14 = vadd.f32 %v458_v12, %v346_v9  ;;  %731 = vmatmul.f32.gmra.mxu3 %v135_v10  ;;  %v289_v9 = vld [vmem:[#allocation5 + $0x328] sm:$0xff]  ;;  %787 = vmatpush.msrb.mxu0 %v193_v8 }
  0xc3   :  { %v571_v17 = vpop.f32.mrf.mxu2  ;;  %1126 = vmatpush.msrb.mxu3 %v289_v9  ;;  %v225_v12 = vld [vmem:[#allocation5 + $0x128] sm:$0xff] }
  0xc4   :  { %v572_v18 = vadd.f32 %v571_v17, %v459_v14  ;;  %505 = vmatmul.f32.gmra.mxu1 %v133_v13  ;;  %v1594_v14 = vld [vmem:[#allocation2 + $0x2f0] sm:$0xff]  ;;  %v1596_v17 = vld [vmem:[#allocation2 + $0x2e0] sm:$0xff]  ;;  %788 = vmatpush.msrb.mxu0 %v191_v45  ;;  %v1651_v45 = vld [vmem:[#allocation2 + $0x378] sm:$0xff] }
  0xc5   :  { %v684_v20 = vpop.f32.mrf.mxu3  ;;  %900 = vmatpush.msrb.mxu1 %v225_v12  ;;  %v1638_v12 = vld [vmem:[#allocation2 + $0x358] sm:$0xff] }
  0xc6   :  { %v685_v22 = vadd.f32 %v684_v20, %v572_v18  ;;  %v348_v23 = vpop.f32.mrf.mxu0 }
  0xc7   :  { %v349_v25 = vadd.f32 %v348_v23, %v1537_v41 }
  0xc8   :  { %1230 = vst [vmem:[#allocation8 + $0x20] sm:$0xff] %v685_v22  ;;  %621 = vmatmul.f32.gmra.mxu2 %v1542_v21  ;;  %v1603_v22 = vld [vmem:[#allocation2 + $0x2e8] sm:$0xff] }
  0xc9   :  { %v461_v27 = vpop.f32.mrf.mxu1  ;;  %395 = vmatmul.f32.gmra.mxu0 %v1544_v24 }
  0xca   :  { %v462_v29 = vadd.f32 %v461_v27, %v349_v25  ;;  %734 = vmatmul.f32.gmra.mxu3 %v1547_v26 }
  0xcb   :  { %v574_v30 = vpop.f32.mrf.mxu2 }
  0xcc   :  { %v575_v31 = vadd.f32 %v574_v30, %v462_v29  ;;  %508 = vmatmul.f32.gmra.mxu1 %v1551_v28  ;;  %v1607_v30 = vld [vmem:[#allocation2 + $0x310] sm:$0xff] }
  0xcd   :  { %v687_v32 = vpop.f32.mrf.mxu3 }
  0xce   :  { %v688_v34 = vadd.f32 %v687_v32, %v575_v31  ;;  %v351_v35 = vpop.f32.mrf.mxu0 }
  0xcf   :  { %v352_v37 = vadd.f32 %v351_v35, %v1537_v41 }
  0xd0   :  { %1232 = vst [vmem:[#allocation8 + $0x30] sm:$0xff] %v688_v34  ;;  %624 = vmatmul.f32.gmra.mxu2 %v1555_v33  ;;  %v1609_v34 = vld [vmem:[#allocation2 + $0x300] sm:$0xff] }
  0xd1   :  { %v464_v40 = vpop.f32.mrf.mxu1  ;;  %398 = vmatmul.f32.gmra.mxu0 %v1557_v36 }
  0xd2   :  { %v465_v43 = vadd.f32 %v464_v40, %v352_v37  ;;  %737 = vmatmul.f32.gmra.mxu3 %v1560_v38  ;;  %v1612_v37 = vld [vmem:[#allocation2 + $0x318] sm:$0xff] }
  0xd3   :  { %v577_v46 = vpop.f32.mrf.mxu2 }
  0xd4   :  { %v578_v47 = vadd.f32 %v577_v46, %v465_v43  ;;  %511 = vmatmul.f32.gmra.mxu1 %v1564_v42  ;;  %v1616_v43 = vld [vmem:[#allocation2 + $0x308] sm:$0xff]  ;;  %v287_v46 = vld [vmem:[#allocation5 + $0x318] sm:$0xff] }
  0xd5   :  { %v690_v49 = vpop.f32.mrf.mxu3  ;;  %1127 = vmatpush.msrb.mxu3 %v287_v46 }
  0xd6   :  { %v691_v51 = vadd.f32 %v690_v49, %v578_v47  ;;  %v354_v52 = vpop.f32.mrf.mxu0  ;;  %v223_v49 = vld [vmem:[#allocation5 + $0x118] sm:$0xff] }
  0xd7   :  { %v355_v54 = vadd.f32 %v354_v52, %v1537_v41  ;;  %v1620_v52 = vld [vmem:[#allocation2 + $0x330] sm:$0xff]  ;;  %901 = vmatpush.msrb.mxu1 %v223_v49 }
  0xd8   :  { %1234 = vst [vmem:[#allocation8 + $0x40] sm:$0xff] %v691_v51  ;;  %627 = vmatmul.f32.gmra.mxu2 %v1568_v50 }
  0xd9   :  { %v467_v56 = vpop.f32.mrf.mxu1  ;;  %401 = vmatmul.f32.gmra.mxu0 %v1570_v53 }
  0xda   :  { %v468_v58 = vadd.f32 %v467_v56, %v355_v54  ;;  %740 = vmatmul.f32.gmra.mxu3 %v1573_v55 }
  0xdb   :  { %v580_v59 = vpop.f32.mrf.mxu2 }
  0xdc   :  { %v581_v60 = vadd.f32 %v580_v59, %v468_v58  ;;  %514 = vmatmul.f32.gmra.mxu1 %v1577_v57  ;;  %v1622_v58 = vld [vmem:[#allocation2 + $0x320] sm:$0xff] }
  0xdd   :  { %v693_v61 = vpop.f32.mrf.mxu3 }
  0xde   :  { %v694_v63 = vadd.f32 %v693_v61, %v581_v60  ;;  %v357_v0 = vpop.f32.mrf.mxu0  ;;  %v1625_v60 = vld [vmem:[#allocation2 + $0x338] sm:$0xff] }
  0xdf   :  { %v358_v2 = vadd.f32 %v357_v0, %v1537_v41 }
  0xe0   :  { %1236 = vst [vmem:[#allocation8 + $0x50] sm:$0xff] %v694_v63  ;;  %630 = vmatmul.f32.gmra.mxu2 %v1581_v62  ;;  %v1629_v63 = vld [vmem:[#allocation2 + $0x328] sm:$0xff] }
  0xe1   :  { %v470_v5 = vpop.f32.mrf.mxu1  ;;  %404 = vmatmul.f32.gmra.mxu0 %v1583_v1 }
  0xe2   :  { %v471_v7 = vadd.f32 %v470_v5, %v358_v2  ;;  %743 = vmatmul.f32.gmra.mxu3 %v1586_v3 }
  0xe3   :  { %v583_v10 = vpop.f32.mrf.mxu2 }
  0xe4   :  { %v584_v11 = vadd.f32 %v583_v10, %v471_v7  ;;  %517 = vmatmul.f32.gmra.mxu1 %v1590_v6  ;;  %v1633_v7 = vld [vmem:[#allocation2 + $0x350] sm:$0xff]  ;;  %v1635_v10 = vld [vmem:[#allocation2 + $0x340] sm:$0xff] }
  0xe5   :  { %v696_v13 = vpop.f32.mrf.mxu3 }
  0xe6   :  { %v697_v15 = vadd.f32 %v696_v13, %v584_v11  ;;  %v360_v16 = vpop.f32.mrf.mxu0  ;;  %v253_v13 = vld [vmem:[#allocation5 + $0x208] sm:$0xff] }
  0xe7   :  { %v361_v18 = vadd.f32 %v360_v16, %v1537_v41  ;;  %v1642_v16 = vld [vmem:[#allocation2 + $0x348] sm:$0xff]  ;;  %1015 = vmatpush.msrb.mxu2 %v253_v13 }
  0xe8   :  { %1238 = vst [vmem:[#allocation8 + $0x60] sm:$0xff] %v697_v15  ;;  %633 = vmatmul.f32.gmra.mxu2 %v1594_v14 }
  0xe9   :  { %v473_v20 = vpop.f32.mrf.mxu1  ;;  %407 = vmatmul.f32.gmra.mxu0 %v1596_v17 }
  0xea   :  { %v474_v23 = vadd.f32 %v473_v20, %v361_v18  ;;  %746 = vmatmul.f32.gmra.mxu3 %v1599_v19  ;;  %v189_v20 = vld [vmem:[#allocation5 + $0x8] sm:$0xff] }
  0xeb   :  { %v586_v25 = vpop.f32.mrf.mxu2  ;;  %789 = vmatpush.msrb.mxu0 %v189_v20 }
  0xec   :  { %v587_v27 = vadd.f32 %v586_v25, %v474_v23  ;;  %520 = vmatmul.f32.gmra.mxu1 %v1603_v22  ;;  %v285_v23 = vld [vmem:[#allocation5 + $0x308] sm:$0xff] }
  0xed   :  { %v699_v29 = vpop.f32.mrf.mxu3  ;;  %1128 = vmatpush.msrb.mxu3 %v285_v23 }
  0xee   :  { %v700_v31 = vadd.f32 %v699_v29, %v587_v27  ;;  %v363_v32 = vpop.f32.mrf.mxu0  ;;  %v221_v29 = vld [vmem:[#allocation5 + $0x108] sm:$0xff] }
  0xef   :  { %v364_v35 = vadd.f32 %v363_v32, %v1537_v41  ;;  %v1646_v32 = vld [vmem:[#allocation2 + $0x370] sm:$0xff]  ;;  %902 = vmatpush.msrb.mxu1 %v221_v29  ;;  %v1677_v29 = vld [vmem:[#allocation2 + $0x3b8] sm:$0xff] }
  0xf0   :  { %1240 = vst [vmem:[#allocation8 + $0x70] sm:$0xff] %v700_v31  ;;  %636 = vmatmul.f32.gmra.mxu2 %v1607_v30 }
  0xf1   :  { %v476_v40 = vpop.f32.mrf.mxu1  ;;  %410 = vmatmul.f32.gmra.mxu0 %v1609_v34 }
  0xf2   :  { %v477_v44 = vadd.f32 %v476_v40, %v364_v35  ;;  %749 = vmatmul.f32.gmra.mxu3 %v1612_v37  ;;  %v1648_v40 = vld [vmem:[#allocation2 + $0x360] sm:$0xff] }
  0xf3   :  { %v589_v47 = vpop.f32.mrf.mxu2 }
  0xf4   :  { %v590_v48 = vadd.f32 %v589_v47, %v477_v44  ;;  %523 = vmatmul.f32.gmra.mxu1 %v1616_v43  ;;  %v1655_v47 = vld [vmem:[#allocation2 + $0x368] sm:$0xff] }
  0xf5   :  { %v702_v51 = vpop.f32.mrf.mxu3 }
  0xf6   :  { %v703_v54 = vadd.f32 %v702_v51, %v590_v48  ;;  %v366_v56 = vpop.f32.mrf.mxu0 }
  0xf7   :  { %v367_v59 = vadd.f32 %v366_v56, %v1537_v41  ;;  %v1659_v56 = vld [vmem:[#allocation2 + $0x390] sm:$0xff] }
  0xf8   :  { %1242 = vst [vmem:[#allocation8 + $0x80] sm:$0xff] %v703_v54  ;;  %639 = vmatmul.f32.gmra.mxu2 %v1620_v52 }
  0xf9   :  { %v479_v61 = vpop.f32.mrf.mxu1  ;;  %413 = vmatmul.f32.gmra.mxu0 %v1622_v58 }
  0xfa   :  { %v480_v0 = vadd.f32 %v479_v61, %v367_v59  ;;  %752 = vmatmul.f32.gmra.mxu3 %v1625_v60 }
  0xfb   :  { %v592_v2 = vpop.f32.mrf.mxu2 }
  0xfc   :  { %v593_v4 = vadd.f32 %v592_v2, %v480_v0  ;;  %526 = vmatmul.f32.gmra.mxu1 %v1629_v63  ;;  %v1661_v0 = vld [vmem:[#allocation2 + $0x380] sm:$0xff] }
  0xfd   :  { %v705_v5 = vpop.f32.mrf.mxu3 }
  0xfe   :  { %v706_v8 = vadd.f32 %v705_v5, %v593_v4  ;;  %v369_v9 = vpop.f32.mrf.mxu0  ;;  %v1664_v4 = vld [vmem:[#allocation2 + $0x398] sm:$0xff] }
  0xff   :  { %v370_v11 = vadd.f32 %v369_v9, %v1537_v41 }
 0x100   :  { %1244 = vst [vmem:[#allocation8 + $0x90] sm:$0xff] %v706_v8  ;;  %642 = vmatmul.f32.gmra.mxu2 %v1633_v7  ;;  %v1668_v8 = vld [vmem:[#allocation2 + $0x388] sm:$0xff] }
 0x101   :  { %v482_v15 = vpop.f32.mrf.mxu1  ;;  %416 = vmatmul.f32.gmra.mxu0 %v1635_v10 }
 0x102   :  { %v483_v18 = vadd.f32 %v482_v15, %v370_v11  ;;  %755 = vmatmul.f32.gmra.mxu3 %v1638_v12 }
 0x103   :  { %v595_v25 = vpop.f32.mrf.mxu2 }
 0x104   :  { %v596_v27 = vadd.f32 %v595_v25, %v483_v18  ;;  %529 = vmatmul.f32.gmra.mxu1 %v1642_v16  ;;  %v1672_v18 = vld [vmem:[#allocation2 + $0x3b0] sm:$0xff]  ;;  %v1674_v25 = vld [vmem:[#allocation2 + $0x3a0] sm:$0xff] }
 0x105   :  { %v708_v31 = vpop.f32.mrf.mxu3 }
 0x106   :  { %v709_v35 = vadd.f32 %v708_v31, %v596_v27  ;;  %v372_v39 = vpop.f32.mrf.mxu0 }
 0x107   :  { %v373_v44 = vadd.f32 %v372_v39, %v1537_v41 }
 0x108   :  { %1246 = vst [vmem:[#allocation8 + $0xa0] sm:$0xff] %v709_v35  ;;  %645 = vmatmul.f32.gmra.mxu2 %v1646_v32  ;;  %v1681_v35 = vld [vmem:[#allocation2 + $0x3a8] sm:$0xff] }
 0x109   :  { %v485_v46 = vpop.f32.mrf.mxu1  ;;  %419 = vmatmul.f32.gmra.mxu0 %v1648_v40 }
 0x10a   :  { %v486_v48 = vadd.f32 %v485_v46, %v373_v44  ;;  %758 = vmatmul.f32.gmra.mxu3 %v1651_v45 }
 0x10b   :  { %v598_v49 = vpop.f32.mrf.mxu2 }
 0x10c   :  { %v599_v51 = vadd.f32 %v598_v49, %v486_v48  ;;  %532 = vmatmul.f32.gmra.mxu1 %v1655_v47  ;;  %v1685_v49 = vld [vmem:[#allocation2 + $0x3d0] sm:$0xff] }
 0x10d   :  { %v711_v54 = vpop.f32.mrf.mxu3 }
 0x10e   :  { %v712_v59 = vadd.f32 %v711_v54, %v599_v51  ;;  %v375_v61 = vpop.f32.mrf.mxu0 }
 0x10f   :  { %v376_v2 = vadd.f32 %v375_v61, %v1537_v41 }
 0x110   :  { %1248 = vst [vmem:[#allocation8 + $0xb0] sm:$0xff] %v712_v59  ;;  %648 = vmatmul.f32.gmra.mxu2 %v1659_v56  ;;  %v1687_v59 = vld [vmem:[#allocation2 + $0x3c0] sm:$0xff] }
 0x111   :  { %v488_v5 = vpop.f32.mrf.mxu1  ;;  %422 = vmatmul.f32.gmra.mxu0 %v1661_v0 }
 0x112   :  { %v489_v9 = vadd.f32 %v488_v5, %v376_v2  ;;  %761 = vmatmul.f32.gmra.mxu3 %v1664_v4  ;;  %v1690_v2 = vld [vmem:[#allocation2 + $0x3d8] sm:$0xff] }
 0x113   :  { %v601_v11 = vpop.f32.mrf.mxu2 }
 0x114   :  { %v602_v13 = vadd.f32 %v601_v11, %v489_v9  ;;  %535 = vmatmul.f32.gmra.mxu1 %v1668_v8  ;;  %v1694_v9 = vld [vmem:[#allocation2 + $0x3c8] sm:$0xff] }
 0x115   :  { %v714_v15 = vpop.f32.mrf.mxu3  ;;  %1828 = vst [vmem:[#allocation12_spill] sm:$0xff] %v1694_v9 }
 0x116   :  { %v715_v20 = vadd.f32 %v714_v15, %v602_v13  ;;  %v378_v23 = vpop.f32.mrf.mxu0 }
 0x117   :  { %v379_v27 = vadd.f32 %v378_v23, %v1537_v41  ;;  %v1698_v23 = vld [vmem:[#allocation2 + $0x3f0] sm:$0xff] }
 0x118   :  { %1250 = vst [vmem:[#allocation8 + $0xc0] sm:$0xff] %v715_v20  ;;  %651 = vmatmul.f32.gmra.mxu2 %v1672_v18 }
 0x119   :  { %v491_v31 = vpop.f32.mrf.mxu1  ;;  %425 = vmatmul.f32.gmra.mxu0 %v1674_v25  ;;  %1829 = vst [vmem:[#allocation13_spill] sm:$0xff] %v1698_v23 }
 0x11a   :  { %v492_v39 = vadd.f32 %v491_v31, %v379_v27  ;;  %764 = vmatmul.f32.gmra.mxu3 %v1677_v29 }
 0x11b   :  { %v604_v44 = vpop.f32.mrf.mxu2 }
 0x11c   :  { %v605_v46 = vadd.f32 %v604_v44, %v492_v39  ;;  %538 = vmatmul.f32.gmra.mxu1 %v1681_v35  ;;  %v1700_v39 = vld [vmem:[#allocation2 + $0x3e0] sm:$0xff] }
 0x11d   :  { %v717_v48 = vpop.f32.mrf.mxu3  ;;  %1830 = vst [vmem:[#allocation14_spill] sm:$0xff] %v1700_v39 }
 0x11e   :  { %v718_v51 = vadd.f32 %v717_v48, %v605_v46  ;;  %v381_v54 = vpop.f32.mrf.mxu0  ;;  %v1703_v46 = vld [vmem:[#allocation2 + $0x3f8] sm:$0xff] }
 0x11f   :  { %v382_v61 = vadd.f32 %v381_v54, %v1537_v41  ;;  %1831 = vst [vmem:[#allocation15_spill] sm:$0xff] %v1703_v46 }
 0x120   :  { %1252 = vst [vmem:[#allocation8 + $0xd0] sm:$0xff] %v718_v51  ;;  %654 = vmatmul.f32.gmra.mxu2 %v1685_v49  ;;  %v1707_v51 = vld [vmem:[#allocation2 + $0x3e8] sm:$0xff] }
 0x121   :  { %v494_v5 = vpop.f32.mrf.mxu1  ;;  %428 = vmatmul.f32.gmra.mxu0 %v1687_v59  ;;  %1832 = vst [vmem:[#allocation16_spill] sm:$0xff] %v1707_v51 }
 0x122   :  { %v495_v11 = vadd.f32 %v494_v5, %v382_v61  ;;  %767 = vmatmul.f32.gmra.mxu3 %v1690_v2 }
 0x123   :  { %v607_v13 = vpop.f32.mrf.mxu2 }
 0x124   :  { %v608_v15 = vadd.f32 %v607_v13, %v495_v11  ;;  %541 = vmatmul.f32.gmra.mxu1 %v1694_v9  ;;  %v1320_v9 = vld [vmem:[#allocation2 + $0x18] sm:$0xff] }
 0x125   :  { %v720_v20 = vpop.f32.mrf.mxu3 }
 0x126   :  { %v721_v27 = vadd.f32 %v720_v20, %v608_v15  ;;  %v384_v31 = vpop.f32.mrf.mxu0 }
 0x127   :  { %v385_v44 = vadd.f32 %v384_v31, %v1537_v41 }
 0x128   :  { %1254 = vst [vmem:[#allocation8 + $0xe0] sm:$0xff] %v721_v27  ;;  %657 = vmatmul.f32.gmra.mxu2 %v1698_v23  ;;  %v1318_v27 = vld [vmem:[#allocation2 + $0x10] sm:$0xff]  ;;  %v1319_v23 = vld [vmem:[#allocation2] sm:$0xff] }
 0x129   :  { %v497_v48 = vpop.f32.mrf.mxu1  ;;  %431 = vmatmul.f32.gmra.mxu0 %v1700_v39 }
 0x12a   :  { %v498_v54 = vadd.f32 %v497_v48, %v385_v44  ;;  %770 = vmatmul.f32.gmra.mxu3 %v1703_v46  ;;  %v1321_v46 = vld [vmem:[#allocation2 + $0x8] sm:$0xff] }
 0x12b   :  { %v610_v61 = vpop.f32.mrf.mxu2 }
 0x12c   :  { %v611_v5 = vadd.f32 %v610_v61, %v498_v54  ;;  %544 = vmatmul.f32.gmra.mxu1 %v1707_v51 }
 0x12d   :  { %v723_v11 = vpop.f32.mrf.mxu3 }
 0x12e   :  { %v724_v13 = vadd.f32 %v723_v11, %v611_v5  ;;  %v387_v15 = vpop.f32.mrf.mxu0  ;;  %v1322_v11 = vld [vmem:[#allocation2 + $0x30] sm:$0xff] }
 0x12f   :  { %v388_v20 = vadd.f32 %v387_v15, %v1537_v41  ;;  %v1323_v15 = vld [vmem:[#allocation2 + $0x20] sm:$0xff] }
 0x130   :  { %1256 = vst [vmem:[#allocation8 + $0xf0] sm:$0xff] %v724_v13  ;;  %1016 = vmatmul.f32.vlgmr.msrb.gmra.mxu2 %v1318_v27 }
 0x131   :  { %v500_v31 = vpop.f32.mrf.mxu1  ;;  %790 = vmatmul.f32.vlgmr.msrb.gmra.mxu0 %v1319_v23  ;;  %v1324_v23 = vld [vmem:[#allocation2 + $0x38] sm:$0xff] }
 0x132   :  { %v501_v39 = vadd.f32 %v500_v31, %v388_v20  ;;  %1129 = vmatmul.f32.vlgmr.msrb.gmra.mxu3 %v1320_v9  ;;  %v1325_v31 = vld [vmem:[#allocation2 + $0x28] sm:$0xff] }
 0x133   :  { %v613_v44 = vpop.f32.mrf.mxu2 }
 0x134   :  { %v614_v48 = vadd.f32 %v613_v44, %v501_v39  ;;  %903 = vmatmul.f32.vlgmr.msrb.gmra.mxu1 %v1321_v46 }
 0x135   :  { %v726_v54 = vpop.f32.mrf.mxu3 }
 0x136   :  { %v727_v61 = vadd.f32 %v726_v54, %v614_v48  ;;  %v390_v51 = vpop.f32.mrf.mxu0 }
 0x137   :  { %v391_v5 = vadd.f32 %v390_v51, %v1537_v41  ;;  %v1326_v51 = vld [vmem:[#allocation2 + $0x50] sm:$0xff] }
 0x138   :  { %1258 = vst [vmem:[#allocation8 + $0x100] sm:$0xff] %v727_v61  ;;  %1019 = vmatmul.f32.gmra.mxu2 %v1322_v11  ;;  %v1327_v61 = vld [vmem:[#allocation2 + $0x40] sm:$0xff] }
 0x139   :  { %v503_v13 = vpop.f32.mrf.mxu1  ;;  %793 = vmatmul.f32.gmra.mxu0 %v1323_v15  ;;  %v1328_v15 = vld [vmem:[#allocation2 + $0x58] sm:$0xff] }
 0x13a   :  { %v504_v27 = vadd.f32 %v503_v13, %v391_v5  ;;  %1132 = vmatmul.f32.gmra.mxu3 %v1324_v23  ;;  %v1329_v23 = vld [vmem:[#allocation2 + $0x48] sm:$0xff] }
 0x13b   :  { %v616_v20 = vpop.f32.mrf.mxu2 }
 0x13c   :  { %v617_v9 = vadd.f32 %v616_v20, %v504_v27  ;;  %906 = vmatmul.f32.gmra.mxu1 %v1325_v31 }
 0x13d   :  { %v729_v39 = vpop.f32.mrf.mxu3 }
 0x13e   :  { %v730_v46 = vadd.f32 %v729_v39, %v617_v9  ;;  %v393_v44 = vpop.f32.mrf.mxu0  ;;  %v1330_v39 = vld [vmem:[#allocation2 + $0x70] sm:$0xff] }
 0x13f   :  { %v394_v48 = vadd.f32 %v393_v44, %v1537_v41  ;;  %v1331_v44 = vld [vmem:[#allocation2 + $0x60] sm:$0xff] }
 0x140   :  { %1260 = vst [vmem:[#allocation8 + $0x110] sm:$0xff] %v730_v46  ;;  %1022 = vmatmul.f32.gmra.mxu2 %v1326_v51 }
 0x141   :  { %v506_v54 = vpop.f32.mrf.mxu1  ;;  %796 = vmatmul.f32.gmra.mxu0 %v1327_v61  ;;  %v1332_v61 = vld [vmem:[#allocation2 + $0x78] sm:$0xff] }
 0x142   :  { %v507_v11 = vadd.f32 %v506_v54, %v394_v48  ;;  %1135 = vmatmul.f32.gmra.mxu3 %v1328_v15  ;;  %v1333_v15 = vld [vmem:[#allocation2 + $0x68] sm:$0xff] }
 0x143   :  { %v619_v5 = vpop.f32.mrf.mxu2 }
 0x144   :  { %v620_v13 = vadd.f32 %v619_v5, %v507_v11  ;;  %909 = vmatmul.f32.gmra.mxu1 %v1329_v23 }
 0x145   :  { %v732_v27 = vpop.f32.mrf.mxu3 }
 0x146   :  { %v733_v20 = vadd.f32 %v732_v27, %v620_v13  ;;  %v396_v31 = vpop.f32.mrf.mxu0  ;;  %v1334_v27 = vld [vmem:[#allocation2 + $0x90] sm:$0xff] }
 0x147   :  { %v397_v9 = vadd.f32 %v396_v31, %v1537_v41  ;;  %v1335_v31 = vld [vmem:[#allocation2 + $0x80] sm:$0xff] }
 0x148   :  { %1262 = vst [vmem:[#allocation8 + $0x120] sm:$0xff] %v733_v20  ;;  %1025 = vmatmul.f32.gmra.mxu2 %v1330_v39 }
 0x149   :  { %v509_v46 = vpop.f32.mrf.mxu1  ;;  %799 = vmatmul.f32.gmra.mxu0 %v1331_v44  ;;  %v1336_v44 = vld [vmem:[#allocation2 + $0x98] sm:$0xff] }
 0x14a   :  { %v510_v51 = vadd.f32 %v509_v46, %v397_v9  ;;  %1138 = vmatmul.f32.gmra.mxu3 %v1332_v61  ;;  %v1337_v61 = vld [vmem:[#allocation2 + $0x88] sm:$0xff] }
 0x14b   :  { %v622_v48 = vpop.f32.mrf.mxu2 }
 0x14c   :  { %v623_v54 = vadd.f32 %v622_v48, %v510_v51  ;;  %912 = vmatmul.f32.gmra.mxu1 %v1333_v15 }
 0x14d   :  { %v735_v11 = vpop.f32.mrf.mxu3 }
 0x14e   :  { %v736_v5 = vadd.f32 %v735_v11, %v623_v54  ;;  %v399_v23 = vpop.f32.mrf.mxu0  ;;  %v1338_v11 = vld [vmem:[#allocation2 + $0xb0] sm:$0xff] }
 0x14f   :  { %v400_v13 = vadd.f32 %v399_v23, %v1537_v41  ;;  %v1339_v23 = vld [vmem:[#allocation2 + $0xa0] sm:$0xff] }
 0x150   :  { %1264 = vst [vmem:[#allocation8 + $0x130] sm:$0xff] %v736_v5  ;;  %1028 = vmatmul.f32.gmra.mxu2 %v1334_v27 }
 0x151   :  { %v512_v20 = vpop.f32.mrf.mxu1  ;;  %802 = vmatmul.f32.gmra.mxu0 %v1335_v31  ;;  %v1340_v31 = vld [vmem:[#allocation2 + $0xb8] sm:$0xff] }
 0x152   :  { %v513_v39 = vadd.f32 %v512_v20, %v400_v13  ;;  %1141 = vmatmul.f32.gmra.mxu3 %v1336_v44  ;;  %v1341_v44 = vld [vmem:[#allocation2 + $0xa8] sm:$0xff] }
 0x153   :  { %v625_v9 = vpop.f32.mrf.mxu2 }
 0x154   :  { %v626_v46 = vadd.f32 %v625_v9, %v513_v39  ;;  %915 = vmatmul.f32.gmra.mxu1 %v1337_v61 }
 0x155   :  { %v738_v51 = vpop.f32.mrf.mxu3 }
 0x156   :  { %v739_v48 = vadd.f32 %v738_v51, %v626_v46  ;;  %v402_v15 = vpop.f32.mrf.mxu0  ;;  %v1342_v51 = vld [vmem:[#allocation2 + $0xd0] sm:$0xff] }
 0x157   :  { %v403_v54 = vadd.f32 %v402_v15, %v1537_v41  ;;  %v1343_v15 = vld [vmem:[#allocation2 + $0xc0] sm:$0xff] }
 0x158   :  { %1266 = vst [vmem:[#allocation8 + $0x140] sm:$0xff] %v739_v48  ;;  %1031 = vmatmul.f32.gmra.mxu2 %v1338_v11 }
 0x159   :  { %v515_v5 = vpop.f32.mrf.mxu1  ;;  %805 = vmatmul.f32.gmra.mxu0 %v1339_v23  ;;  %v1344_v23 = vld [vmem:[#allocation2 + $0xd8] sm:$0xff] }
 0x15a   :  { %v516_v27 = vadd.f32 %v515_v5, %v403_v54  ;;  %1144 = vmatmul.f32.gmra.mxu3 %v1340_v31  ;;  %v1345_v31 = vld [vmem:[#allocation2 + $0xc8] sm:$0xff] }
 0x15b   :  { %v628_v13 = vpop.f32.mrf.mxu2 }
 0x15c   :  { %v629_v20 = vadd.f32 %v628_v13, %v516_v27  ;;  %918 = vmatmul.f32.gmra.mxu1 %v1341_v44 }
 0x15d   :  { %v741_v39 = vpop.f32.mrf.mxu3 }
 0x15e   :  { %v742_v9 = vadd.f32 %v741_v39, %v629_v20  ;;  %v405_v61 = vpop.f32.mrf.mxu0  ;;  %v1346_v39 = vld [vmem:[#allocation2 + $0xf0] sm:$0xff] }
 0x15f   :  { %v406_v46 = vadd.f32 %v405_v61, %v1537_v41  ;;  %v1347_v61 = vld [vmem:[#allocation2 + $0xe0] sm:$0xff] }
 0x160   :  { %1268 = vst [vmem:[#allocation8 + $0x150] sm:$0xff] %v742_v9  ;;  %1034 = vmatmul.f32.gmra.mxu2 %v1342_v51 }
 0x161   :  { %v518_v48 = vpop.f32.mrf.mxu1  ;;  %808 = vmatmul.f32.gmra.mxu0 %v1343_v15  ;;  %v1348_v15 = vld [vmem:[#allocation2 + $0xf8] sm:$0xff] }
 0x162   :  { %v519_v11 = vadd.f32 %v518_v48, %v406_v46  ;;  %1147 = vmatmul.f32.gmra.mxu3 %v1344_v23  ;;  %v1349_v23 = vld [vmem:[#allocation2 + $0xe8] sm:$0xff] }
 0x163   :  { %v631_v54 = vpop.f32.mrf.mxu2 }
 0x164   :  { %v632_v5 = vadd.f32 %v631_v54, %v519_v11  ;;  %921 = vmatmul.f32.gmra.mxu1 %v1345_v31 }
 0x165   :  { %v744_v27 = vpop.f32.mrf.mxu3 }
 0x166   :  { %v745_v13 = vadd.f32 %v744_v27, %v632_v5  ;;  %v408_v44 = vpop.f32.mrf.mxu0  ;;  %v1350_v27 = vld [vmem:[#allocation2 + $0x110] sm:$0xff] }
 0x167   :  { %v409_v20 = vadd.f32 %v408_v44, %v1537_v41  ;;  %v1351_v44 = vld [vmem:[#allocation2 + $0x100] sm:$0xff] }
 0x168   :  { %1270 = vst [vmem:[#allocation8 + $0x160] sm:$0xff] %v745_v13  ;;  %1037 = vmatmul.f32.gmra.mxu2 %v1346_v39 }
 0x169   :  { %v521_v9 = vpop.f32.mrf.mxu1  ;;  %811 = vmatmul.f32.gmra.mxu0 %v1347_v61  ;;  %v1352_v61 = vld [vmem:[#allocation2 + $0x118] sm:$0xff] }
 0x16a   :  { %v522_v51 = vadd.f32 %v521_v9, %v409_v20  ;;  %1150 = vmatmul.f32.gmra.mxu3 %v1348_v15  ;;  %v1353_v15 = vld [vmem:[#allocation2 + $0x108] sm:$0xff] }
 0x16b   :  { %v634_v46 = vpop.f32.mrf.mxu2 }
 0x16c   :  { %v635_v48 = vadd.f32 %v634_v46, %v522_v51  ;;  %924 = vmatmul.f32.gmra.mxu1 %v1349_v23 }
 0x16d   :  { %v747_v11 = vpop.f32.mrf.mxu3 }
 0x16e   :  { %v748_v54 = vadd.f32 %v747_v11, %v635_v48  ;;  %v411_v31 = vpop.f32.mrf.mxu0  ;;  %v1354_v11 = vld [vmem:[#allocation2 + $0x130] sm:$0xff] }
 0x16f   :  { %v412_v5 = vadd.f32 %v411_v31, %v1537_v41  ;;  %v1355_v31 = vld [vmem:[#allocation2 + $0x120] sm:$0xff] }
 0x170   :  { %1272 = vst [vmem:[#allocation8 + $0x170] sm:$0xff] %v748_v54  ;;  %1040 = vmatmul.f32.gmra.mxu2 %v1350_v27 }
 0x171   :  { %v524_v13 = vpop.f32.mrf.mxu1  ;;  %814 = vmatmul.f32.gmra.mxu0 %v1351_v44  ;;  %v1356_v44 = vld [vmem:[#allocation2 + $0x138] sm:$0xff] }
 0x172   :  { %v525_v39 = vadd.f32 %v524_v13, %v412_v5  ;;  %1153 = vmatmul.f32.gmra.mxu3 %v1352_v61  ;;  %v1357_v61 = vld [vmem:[#allocation2 + $0x128] sm:$0xff] }
 0x173   :  { %v637_v20 = vpop.f32.mrf.mxu2 }
 0x174   :  { %v638_v9 = vadd.f32 %v637_v20, %v525_v39  ;;  %927 = vmatmul.f32.gmra.mxu1 %v1353_v15 }
 0x175   :  { %v750_v51 = vpop.f32.mrf.mxu3 }
 0x176   :  { %v751_v46 = vadd.f32 %v750_v51, %v638_v9  ;;  %v414_v23 = vpop.f32.mrf.mxu0  ;;  %v1358_v51 = vld [vmem:[#allocation2 + $0x150] sm:$0xff] }
 0x177   :  { %v415_v48 = vadd.f32 %v414_v23, %v1537_v41  ;;  %v1359_v23 = vld [vmem:[#allocation2 + $0x140] sm:$0xff] }
 0x178   :  { %1274 = vst [vmem:[#allocation8 + $0x180] sm:$0xff] %v751_v46  ;;  %1043 = vmatmul.f32.gmra.mxu2 %v1354_v11 }
 0x179   :  { %v527_v54 = vpop.f32.mrf.mxu1  ;;  %817 = vmatmul.f32.gmra.mxu0 %v1355_v31  ;;  %v1360_v31 = vld [vmem:[#allocation2 + $0x158] sm:$0xff] }
 0x17a   :  { %v528_v27 = vadd.f32 %v527_v54, %v415_v48  ;;  %1156 = vmatmul.f32.gmra.mxu3 %v1356_v44  ;;  %v1361_v44 = vld [vmem:[#allocation2 + $0x148] sm:$0xff] }
 0x17b   :  { %v640_v5 = vpop.f32.mrf.mxu2 }
 0x17c   :  { %v641_v13 = vadd.f32 %v640_v5, %v528_v27  ;;  %930 = vmatmul.f32.gmra.mxu1 %v1357_v61 }
 0x17d   :  { %v753_v39 = vpop.f32.mrf.mxu3 }
 0x17e   :  { %v754_v20 = vadd.f32 %v753_v39, %v641_v13  ;;  %v417_v15 = vpop.f32.mrf.mxu0  ;;  %v1362_v39 = vld [vmem:[#allocation2 + $0x170] sm:$0xff] }
 0x17f   :  { %v418_v9 = vadd.f32 %v417_v15, %v1537_v41  ;;  %v1363_v15 = vld [vmem:[#allocation2 + $0x160] sm:$0xff] }
 0x180   :  { %1276 = vst [vmem:[#allocation8 + $0x190] sm:$0xff] %v754_v20  ;;  %1046 = vmatmul.f32.gmra.mxu2 %v1358_v51 }
 0x181   :  { %v530_v46 = vpop.f32.mrf.mxu1  ;;  %820 = vmatmul.f32.gmra.mxu0 %v1359_v23  ;;  %v1364_v23 = vld [vmem:[#allocation2 + $0x178] sm:$0xff] }
 0x182   :  { %v531_v11 = vadd.f32 %v530_v46, %v418_v9  ;;  %1159 = vmatmul.f32.gmra.mxu3 %v1360_v31  ;;  %v1365_v31 = vld [vmem:[#allocation2 + $0x168] sm:$0xff] }
 0x183   :  { %v643_v48 = vpop.f32.mrf.mxu2 }
 0x184   :  { %v644_v54 = vadd.f32 %v643_v48, %v531_v11  ;;  %933 = vmatmul.f32.gmra.mxu1 %v1361_v44 }
 0x185   :  { %v756_v27 = vpop.f32.mrf.mxu3 }
 0x186   :  { %v757_v5 = vadd.f32 %v756_v27, %v644_v54  ;;  %v420_v61 = vpop.f32.mrf.mxu0  ;;  %v1366_v27 = vld [vmem:[#allocation2 + $0x190] sm:$0xff] }
 0x187   :  { %v421_v13 = vadd.f32 %v420_v61, %v1537_v41  ;;  %v1367_v61 = vld [vmem:[#allocation2 + $0x180] sm:$0xff] }
 0x188   :  { %1278 = vst [vmem:[#allocation8 + $0x1a0] sm:$0xff] %v757_v5  ;;  %1049 = vmatmul.f32.gmra.mxu2 %v1362_v39 }
 0x189   :  { %v533_v20 = vpop.f32.mrf.mxu1  ;;  %823 = vmatmul.f32.gmra.mxu0 %v1363_v15  ;;  %v1368_v15 = vld [vmem:[#allocation2 + $0x198] sm:$0xff] }
 0x18a   :  { %v534_v51 = vadd.f32 %v533_v20, %v421_v13  ;;  %1162 = vmatmul.f32.gmra.mxu3 %v1364_v23  ;;  %v1369_v23 = vld [vmem:[#allocation2 + $0x188] sm:$0xff] }
 0x18b   :  { %v646_v9 = vpop.f32.mrf.mxu2 }
 0x18c   :  { %v647_v46 = vadd.f32 %v646_v9, %v534_v51  ;;  %936 = vmatmul.f32.gmra.mxu1 %v1365_v31 }
 0x18d   :  { %v759_v11 = vpop.f32.mrf.mxu3 }
 0x18e   :  { %v760_v48 = vadd.f32 %v759_v11, %v647_v46  ;;  %v423_v44 = vpop.f32.mrf.mxu0  ;;  %v1370_v11 = vld [vmem:[#allocation2 + $0x1b0] sm:$0xff] }
 0x18f   :  { %v424_v54 = vadd.f32 %v423_v44, %v1537_v41  ;;  %v1371_v44 = vld [vmem:[#allocation2 + $0x1a0] sm:$0xff] }
 0x190   :  { %1280 = vst [vmem:[#allocation8 + $0x1b0] sm:$0xff] %v760_v48  ;;  %1052 = vmatmul.f32.gmra.mxu2 %v1366_v27 }
 0x191   :  { %v536_v5 = vpop.f32.mrf.mxu1  ;;  %826 = vmatmul.f32.gmra.mxu0 %v1367_v61  ;;  %v1372_v61 = vld [vmem:[#allocation2 + $0x1b8] sm:$0xff] }
 0x192   :  { %v537_v39 = vadd.f32 %v536_v5, %v424_v54  ;;  %1165 = vmatmul.f32.gmra.mxu3 %v1368_v15  ;;  %v1373_v15 = vld [vmem:[#allocation2 + $0x1a8] sm:$0xff] }
 0x193   :  { %v649_v13 = vpop.f32.mrf.mxu2 }
 0x194   :  { %v650_v20 = vadd.f32 %v649_v13, %v537_v39  ;;  %939 = vmatmul.f32.gmra.mxu1 %v1369_v23 }
 0x195   :  { %v762_v51 = vpop.f32.mrf.mxu3 }
 0x196   :  { %v763_v9 = vadd.f32 %v762_v51, %v650_v20  ;;  %v426_v31 = vpop.f32.mrf.mxu0  ;;  %v1374_v51 = vld [vmem:[#allocation2 + $0x1d0] sm:$0xff] }
 0x197   :  { %v427_v46 = vadd.f32 %v426_v31, %v1537_v41  ;;  %v1375_v31 = vld [vmem:[#allocation2 + $0x1c0] sm:$0xff] }
 0x198   :  { %1282 = vst [vmem:[#allocation8 + $0x1c0] sm:$0xff] %v763_v9  ;;  %1055 = vmatmul.f32.gmra.mxu2 %v1370_v11 }
 0x199   :  { %v539_v48 = vpop.f32.mrf.mxu1  ;;  %829 = vmatmul.f32.gmra.mxu0 %v1371_v44  ;;  %v1376_v44 = vld [vmem:[#allocation2 + $0x1d8] sm:$0xff] }
 0x19a   :  { %v540_v27 = vadd.f32 %v539_v48, %v427_v46  ;;  %1168 = vmatmul.f32.gmra.mxu3 %v1372_v61  ;;  %v1377_v61 = vld [vmem:[#allocation2 + $0x1c8] sm:$0xff] }
 0x19b   :  { %v652_v54 = vpop.f32.mrf.mxu2 }
 0x19c   :  { %v653_v5 = vadd.f32 %v652_v54, %v540_v27  ;;  %942 = vmatmul.f32.gmra.mxu1 %v1373_v15 }
 0x19d   :  { %v765_v39 = vpop.f32.mrf.mxu3 }
 0x19e   :  { %v766_v13 = vadd.f32 %v765_v39, %v653_v5  ;;  %v429_v23 = vpop.f32.mrf.mxu0  ;;  %v1378_v39 = vld [vmem:[#allocation2 + $0x1f0] sm:$0xff] }
 0x19f   :  { %v430_v20 = vadd.f32 %v429_v23, %v1537_v41  ;;  %v1379_v23 = vld [vmem:[#allocation2 + $0x1e0] sm:$0xff] }
 0x1a0   :  { %1284 = vst [vmem:[#allocation8 + $0x1d0] sm:$0xff] %v766_v13  ;;  %1058 = vmatmul.f32.gmra.mxu2 %v1374_v51 }
 0x1a1   :  { %v542_v9 = vpop.f32.mrf.mxu1  ;;  %832 = vmatmul.f32.gmra.mxu0 %v1375_v31  ;;  %v1380_v31 = vld [vmem:[#allocation2 + $0x1f8] sm:$0xff] }
 0x1a2   :  { %v543_v11 = vadd.f32 %v542_v9, %v430_v20  ;;  %1171 = vmatmul.f32.gmra.mxu3 %v1376_v44  ;;  %v1381_v9 = vld [vmem:[#allocation7] sm:$0x3] }
 0x1a3   :  { %v655_v46 = vpop.f32.mrf.mxu2  ;;  %v1727_v44 = vperm.slane %v1381_v9, 1  ;;  %v1386_v9 = vld [vmem:[#allocation2 + $0x208] sm:$0xff] }
 0x1a4   :  { %v656_v48 = vadd.f32 %v655_v46, %v543_v11  ;;  %945 = vmatmul.f32.gmra.mxu1 %v1377_v61  ;;  %v1382_v46 = vld [vmem:[#allocation2 + $0x1e8] sm:$0xff] }
 0x1a5   :  { %v768_v27 = vpop.f32.mrf.mxu3 }
 0x1a6   :  { %v769_v54 = vadd.f32 %v768_v27, %v656_v48  ;;  %v432_v15 = vpop.f32.mrf.mxu0 }
 0x1a7   :  { %v433_v5 = vadd.f32 %v432_v15, %v1537_v41 }
 0x1a8   :  { %1286 = vst [vmem:[#allocation8 + $0x1e0] sm:$0xff] %v769_v54  ;;  %1061 = vmatmul.f32.gmra.mxu2 %v1378_v39  ;;  %v1383_v54 = vld [vmem:[#allocation2 + $0x210] sm:$0xff]  ;;  %v1384_v39 = vld [vmem:[#allocation2 + $0x200] sm:$0xff] }
 0x1a9   :  { %v545_v13 = vpop.f32.mrf.mxu1  ;;  %835 = vmatmul.f32.gmra.mxu0 %v1379_v23 }
 0x1aa   :  { %v546_v51 = vadd.f32 %v545_v13, %v433_v5  ;;  %1174 = vmatmul.f32.gmra.mxu3 %v1380_v31  ;;  %v1385_v13 = vld [vmem:[#allocation2 + $0x218] sm:$0xff] }
 0x1ab   :  { %v658_v20 = vpop.f32.mrf.mxu2 }
 0x1ac   :  { %v659_v11 = vadd.f32 %v658_v20, %v546_v51  ;;  %948 = vmatmul.f32.gmra.mxu1 %v1382_v46 }
 0x1ad   :  { %v771_v48 = vpop.f32.mrf.mxu3 }
 0x1ae   :  { %v772_v61 = vadd.f32 %v771_v48, %v659_v11  ;;  %v791_v27 = vpop.f32.mrf.mxu0  ;;  %v1387_v48 = vld [vmem:[#allocation2 + $0x230] sm:$0xff] }
 0x1af   :  { %v792_v41 = vadd.f32 %v791_v27, %v1727_v44  ;;  %v1388_v27 = vld [vmem:[#allocation2 + $0x220] sm:$0xff] }
 0x1b0   :  { %1288 = vst [vmem:[#allocation8 + $0x1f0] sm:$0xff] %v772_v61  ;;  %1064 = vmatmul.f32.gmra.mxu2 %v1383_v54 }
 0x1b1   :  { %v904_v15 = vpop.f32.mrf.mxu1  ;;  %838 = vmatmul.f32.gmra.mxu0 %v1384_v39  ;;  %v1389_v39 = vld [vmem:[#allocation2 + $0x238] sm:$0xff] }
 0x1b2   :  { %v905_v5 = vadd.f32 %v904_v15, %v792_v41  ;;  %1177 = vmatmul.f32.gmra.mxu3 %v1385_v13  ;;  %v1390_v13 = vld [vmem:[#allocation2 + $0x228] sm:$0xff] }
 0x1b3   :  { %v1017_v23 = vpop.f32.mrf.mxu2 }
 0x1b4   :  { %v1018_v31 = vadd.f32 %v1017_v23, %v905_v5  ;;  %951 = vmatmul.f32.gmra.mxu1 %v1386_v9 }
 0x1b5   :  { %v1130_v51 = vpop.f32.mrf.mxu3 }
 0x1b6   :  { %v1131_v20 = vadd.f32 %v1130_v51, %v1018_v31  ;;  %v794_v46 = vpop.f32.mrf.mxu0  ;;  %v1391_v51 = vld [vmem:[#allocation2 + $0x250] sm:$0xff] }
 0x1b7   :  { %v795_v11 = vadd.f32 %v794_v46, %v1727_v44  ;;  %v1392_v46 = vld [vmem:[#allocation2 + $0x240] sm:$0xff] }
 0x1b8   :  { %1227 = vst [vmem:[#allocation8 + $0x8] sm:$0xff] %v1131_v20  ;;  %1067 = vmatmul.f32.gmra.mxu2 %v1387_v48 }
 0x1b9   :  { %v907_v61 = vpop.f32.mrf.mxu1  ;;  %841 = vmatmul.f32.gmra.mxu0 %v1388_v27  ;;  %v1393_v27 = vld [vmem:[#allocation2 + $0x258] sm:$0xff] }
 0x1ba   :  { %v908_v54 = vadd.f32 %v907_v61, %v795_v11  ;;  %1180 = vmatmul.f32.gmra.mxu3 %v1389_v39  ;;  %v1394_v39 = vld [vmem:[#allocation2 + $0x248] sm:$0xff] }
 0x1bb   :  { %v1020_v41 = vpop.f32.mrf.mxu2 }
 0x1bc   :  { %v1021_v15 = vadd.f32 %v1020_v41, %v908_v54  ;;  %954 = vmatmul.f32.gmra.mxu1 %v1390_v13 }
 0x1bd   :  { %v1133_v5 = vpop.f32.mrf.mxu3 }
 0x1be   :  { %v1134_v23 = vadd.f32 %v1133_v5, %v1021_v15  ;;  %v797_v9 = vpop.f32.mrf.mxu0 }
 0x1bf   :  { %v798_v31 = vadd.f32 %v797_v9, %v1727_v44 }
 0x1c0   :  { %1229 = vst [vmem:[#allocation8 + $0x18] sm:$0xff] %v1134_v23  ;;  %1070 = vmatmul.f32.gmra.mxu2 %v1391_v51 }
 0x1c1   :  { %v910_v20 = vpop.f32.mrf.mxu1  ;;  %844 = vmatmul.f32.gmra.mxu0 %v1392_v46 }
 0x1c2   :  { %v911_v48 = vadd.f32 %v910_v20, %v798_v31  ;;  %1183 = vmatmul.f32.gmra.mxu3 %v1393_v27 }
 0x1c3   :  { %v1023_v11 = vpop.f32.mrf.mxu2 }
 0x1c4   :  { %v1024_v61 = vadd.f32 %v1023_v11, %v911_v48  ;;  %957 = vmatmul.f32.gmra.mxu1 %v1394_v39 }
 0x1c5   :  { %v1136_v54 = vpop.f32.mrf.mxu3 }
 0x1c6   :  { %v1137_v41 = vadd.f32 %v1136_v54, %v1024_v61  ;;  %v800_v13 = vpop.f32.mrf.mxu0 }
 0x1c7   :  { %v801_v15 = vadd.f32 %v800_v13, %v1727_v44 }
 0x1c8   :  { %1231 = vst [vmem:[#allocation8 + $0x28] sm:$0xff] %v1137_v41  ;;  %1073 = vmatmul.f32.gmra.mxu2 %v1542_v21 }
 0x1c9   :  { %v913_v5 = vpop.f32.mrf.mxu1  ;;  %847 = vmatmul.f32.gmra.mxu0 %v1544_v24 }
 0x1ca   :  { %v914_v23 = vadd.f32 %v913_v5, %v801_v15  ;;  %1186 = vmatmul.f32.gmra.mxu3 %v1547_v26 }
 0x1cb   :  { %v1026_v9 = vpop.f32.mrf.mxu2 }
 0x1cc   :  { %v1027_v31 = vadd.f32 %v1026_v9, %v914_v23  ;;  %960 = vmatmul.f32.gmra.mxu1 %v1551_v28 }
 0x1cd   :  { %v1139_v51 = vpop.f32.mrf.mxu3 }
 0x1ce   :  { %v1140_v20 = vadd.f32 %v1139_v51, %v1027_v31  ;;  %v803_v46 = vpop.f32.mrf.mxu0 }
 0x1cf   :  { %v804_v48 = vadd.f32 %v803_v46, %v1727_v44 }
 0x1d0   :  { %1233 = vst [vmem:[#allocation8 + $0x38] sm:$0xff] %v1140_v20  ;;  %1076 = vmatmul.f32.gmra.mxu2 %v1555_v33 }
 0x1d1   :  { %v916_v27 = vpop.f32.mrf.mxu1  ;;  %850 = vmatmul.f32.gmra.mxu0 %v1557_v36 }
 0x1d2   :  { %v917_v21 = vadd.f32 %v916_v27, %v804_v48  ;;  %1189 = vmatmul.f32.gmra.mxu3 %v1560_v38 }
 0x1d3   :  { %v1029_v24 = vpop.f32.mrf.mxu2 }
 0x1d4   :  { %v1030_v26 = vadd.f32 %v1029_v24, %v917_v21  ;;  %963 = vmatmul.f32.gmra.mxu1 %v1564_v42 }
 0x1d5   :  { %v1142_v11 = vpop.f32.mrf.mxu3 }
 0x1d6   :  { %v1143_v28 = vadd.f32 %v1142_v11, %v1030_v26  ;;  %v806_v61 = vpop.f32.mrf.mxu0 }
 0x1d7   :  { %v807_v39 = vadd.f32 %v806_v61, %v1727_v44 }
 0x1d8   :  { %1235 = vst [vmem:[#allocation8 + $0x48] sm:$0xff] %v1143_v28  ;;  %1079 = vmatmul.f32.gmra.mxu2 %v1568_v50 }
 0x1d9   :  { %v919_v54 = vpop.f32.mrf.mxu1  ;;  %853 = vmatmul.f32.gmra.mxu0 %v1570_v53 }
 0x1da   :  { %v920_v33 = vadd.f32 %v919_v54, %v807_v39  ;;  %1192 = vmatmul.f32.gmra.mxu3 %v1573_v55 }
 0x1db   :  { %v1032_v36 = vpop.f32.mrf.mxu2 }
 0x1dc   :  { %v1033_v38 = vadd.f32 %v1032_v36, %v920_v33  ;;  %966 = vmatmul.f32.gmra.mxu1 %v1577_v57 }
 0x1dd   :  { %v1145_v41 = vpop.f32.mrf.mxu3 }
 0x1de   :  { %v1146_v42 = vadd.f32 %v1145_v41, %v1033_v38  ;;  %v809_v13 = vpop.f32.mrf.mxu0 }
 0x1df   :  { %v810_v15 = vadd.f32 %v809_v13, %v1727_v44 }
 0x1e0   :  { %1237 = vst [vmem:[#allocation8 + $0x58] sm:$0xff] %v1146_v42  ;;  %1082 = vmatmul.f32.gmra.mxu2 %v1581_v62 }
 0x1e1   :  { %v922_v5 = vpop.f32.mrf.mxu1  ;;  %856 = vmatmul.f32.gmra.mxu0 %v1583_v1 }
 0x1e2   :  { %v923_v50 = vadd.f32 %v922_v5, %v810_v15  ;;  %1195 = vmatmul.f32.gmra.mxu3 %v1586_v3 }
 0x1e3   :  { %v1035_v53 = vpop.f32.mrf.mxu2 }
 0x1e4   :  { %v1036_v55 = vadd.f32 %v1035_v53, %v923_v50  ;;  %969 = vmatmul.f32.gmra.mxu1 %v1590_v6 }
 0x1e5   :  { %v1148_v23 = vpop.f32.mrf.mxu3 }
 0x1e6   :  { %v1149_v57 = vadd.f32 %v1148_v23, %v1036_v55  ;;  %v812_v9 = vpop.f32.mrf.mxu0 }
 0x1e7   :  { %v813_v31 = vadd.f32 %v812_v9, %v1727_v44 }
 0x1e8   :  { %1239 = vst [vmem:[#allocation8 + $0x68] sm:$0xff] %v1149_v57  ;;  %1085 = vmatmul.f32.gmra.mxu2 %v1594_v14 }
 0x1e9   :  { %v925_v51 = vpop.f32.mrf.mxu1  ;;  %859 = vmatmul.f32.gmra.mxu0 %v1596_v17 }
 0x1ea   :  { %v926_v62 = vadd.f32 %v925_v51, %v813_v31  ;;  %1198 = vmatmul.f32.gmra.mxu3 %v1599_v19 }
 0x1eb   :  { %v1038_v1 = vpop.f32.mrf.mxu2 }
 0x1ec   :  { %v1039_v3 = vadd.f32 %v1038_v1, %v926_v62  ;;  %972 = vmatmul.f32.gmra.mxu1 %v1603_v22  ;;  %v1833_v62 = vld [vmem:[#allocation12_spill] sm:$0xff] }
 0x1ed   :  { %v1151_v20 = vpop.f32.mrf.mxu3 }
 0x1ee   :  { %v1152_v6 = vadd.f32 %v1151_v20, %v1039_v3  ;;  %v815_v46 = vpop.f32.mrf.mxu0 }
 0x1ef   :  { %v816_v48 = vadd.f32 %v815_v46, %v1727_v44 }
 0x1f0   :  { %1241 = vst [vmem:[#allocation8 + $0x78] sm:$0xff] %v1152_v6  ;;  %1088 = vmatmul.f32.gmra.mxu2 %v1607_v30  ;;  %v1834_v6 = vld [vmem:[#allocation13_spill] sm:$0xff] }
 0x1f1   :  { %v928_v27 = vpop.f32.mrf.mxu1  ;;  %862 = vmatmul.f32.gmra.mxu0 %v1609_v34 }
 0x1f2   :  { %v929_v14 = vadd.f32 %v928_v27, %v816_v48  ;;  %1201 = vmatmul.f32.gmra.mxu3 %v1612_v37 }
 0x1f3   :  { %v1041_v17 = vpop.f32.mrf.mxu2 }
 0x1f4   :  { %v1042_v19 = vadd.f32 %v1041_v17, %v929_v14  ;;  %975 = vmatmul.f32.gmra.mxu1 %v1616_v43  ;;  %v1837_v14 = vld [vmem:[#allocation16_spill] sm:$0xff] }
 0x1f5   :  { %v1154_v21 = vpop.f32.mrf.mxu3 }
 0x1f6   :  { %v1155_v22 = vadd.f32 %v1154_v21, %v1042_v19  ;;  %v818_v24 = vpop.f32.mrf.mxu0 }
 0x1f7   :  { %v819_v26 = vadd.f32 %v818_v24, %v1727_v44 }
 0x1f8   :  { %1243 = vst [vmem:[#allocation8 + $0x88] sm:$0xff] %v1155_v22  ;;  %1091 = vmatmul.f32.gmra.mxu2 %v1620_v52 }
 0x1f9   :  { %v931_v11 = vpop.f32.mrf.mxu1  ;;  %865 = vmatmul.f32.gmra.mxu0 %v1622_v58 }
 0x1fa   :  { %v932_v30 = vadd.f32 %v931_v11, %v819_v26  ;;  %1204 = vmatmul.f32.gmra.mxu3 %v1625_v60 }
 0x1fb   :  { %v1044_v34 = vpop.f32.mrf.mxu2 }
 0x1fc   :  { %v1045_v37 = vadd.f32 %v1044_v34, %v932_v30  ;;  %978 = vmatmul.f32.gmra.mxu1 %v1629_v63 }
 0x1fd   :  { %v1157_v28 = vpop.f32.mrf.mxu3 }
 0x1fe   :  { %v1158_v43 = vadd.f32 %v1157_v28, %v1045_v37  ;;  %v821_v61 = vpop.f32.mrf.mxu0 }
 0x1ff   :  { %v822_v39 = vadd.f32 %v821_v61, %v1727_v44 }
 0x200   :  { %1245 = vst [vmem:[#allocation8 + $0x98] sm:$0xff] %v1158_v43  ;;  %1094 = vmatmul.f32.gmra.mxu2 %v1633_v7 }
 0x201   :  { %v934_v54 = vpop.f32.mrf.mxu1  ;;  %868 = vmatmul.f32.gmra.mxu0 %v1635_v10 }
 0x202   :  { %v935_v52 = vadd.f32 %v934_v54, %v822_v39  ;;  %1207 = vmatmul.f32.gmra.mxu3 %v1638_v12 }
 0x203   :  { %v1047_v58 = vpop.f32.mrf.mxu2 }
 0x204   :  { %v1048_v60 = vadd.f32 %v1047_v58, %v935_v52  ;;  %981 = vmatmul.f32.gmra.mxu1 %v1642_v16 }
 0x205   :  { %v1160_v33 = vpop.f32.mrf.mxu3 }
 0x206   :  { %v1161_v63 = vadd.f32 %v1160_v33, %v1048_v60  ;;  %v824_v36 = vpop.f32.mrf.mxu0 }
 0x207   :  { %v825_v38 = vadd.f32 %v824_v36, %v1727_v44 }
 0x208   :  { %1247 = vst [vmem:[#allocation8 + $0xa8] sm:$0xff] %v1161_v63  ;;  %1097 = vmatmul.f32.gmra.mxu2 %v1646_v32 }
 0x209   :  { %v937_v41 = vpop.f32.mrf.mxu1  ;;  %871 = vmatmul.f32.gmra.mxu0 %v1648_v40 }
 0x20a   :  { %v938_v7 = vadd.f32 %v937_v41, %v825_v38  ;;  %1210 = vmatmul.f32.gmra.mxu3 %v1651_v45 }
 0x20b   :  { %v1050_v10 = vpop.f32.mrf.mxu2 }
 0x20c   :  { %v1051_v12 = vadd.f32 %v1050_v10, %v938_v7  ;;  %984 = vmatmul.f32.gmra.mxu1 %v1655_v47 }
 0x20d   :  { %v1163_v42 = vpop.f32.mrf.mxu3 }
 0x20e   :  { %v1164_v16 = vadd.f32 %v1163_v42, %v1051_v12  ;;  %v827_v13 = vpop.f32.mrf.mxu0 }
 0x20f   :  { %v828_v15 = vadd.f32 %v827_v13, %v1727_v44 }
 0x210   :  { %1249 = vst [vmem:[#allocation8 + $0xb8] sm:$0xff] %v1164_v16  ;;  %1100 = vmatmul.f32.gmra.mxu2 %v1659_v56 }
 0x211   :  { %v940_v5 = vpop.f32.mrf.mxu1  ;;  %874 = vmatmul.f32.gmra.mxu0 %v1661_v0 }
 0x212   :  { %v941_v32 = vadd.f32 %v940_v5, %v828_v15  ;;  %1213 = vmatmul.f32.gmra.mxu3 %v1664_v4 }
 0x213   :  { %v1053_v40 = vpop.f32.mrf.mxu2 }
 0x214   :  { %v1054_v45 = vadd.f32 %v1053_v40, %v941_v32  ;;  %987 = vmatmul.f32.gmra.mxu1 %v1668_v8 }
 0x215   :  { %v1166_v50 = vpop.f32.mrf.mxu3 }
 0x216   :  { %v1167_v47 = vadd.f32 %v1166_v50, %v1054_v45  ;;  %v830_v53 = vpop.f32.mrf.mxu0 }
 0x217   :  { %v831_v55 = vadd.f32 %v830_v53, %v1727_v44 }
 0x218   :  { %1251 = vst [vmem:[#allocation8 + $0xc8] sm:$0xff] %v1167_v47  ;;  %1103 = vmatmul.f32.gmra.mxu2 %v1672_v18 }
 0x219   :  { %v943_v23 = vpop.f32.mrf.mxu1  ;;  %877 = vmatmul.f32.gmra.mxu0 %v1674_v25 }
 0x21a   :  { %v944_v56 = vadd.f32 %v943_v23, %v831_v55  ;;  %1216 = vmatmul.f32.gmra.mxu3 %v1677_v29 }
 0x21b   :  { %v1056_v0 = vpop.f32.mrf.mxu2 }
 0x21c   :  { %v1057_v4 = vadd.f32 %v1056_v0, %v944_v56  ;;  %990 = vmatmul.f32.gmra.mxu1 %v1681_v35 }
 0x21d   :  { %v1169_v57 = vpop.f32.mrf.mxu3 }
 0x21e   :  { %v1170_v8 = vadd.f32 %v1169_v57, %v1057_v4  ;;  %v833_v9 = vpop.f32.mrf.mxu0 }
 0x21f   :  { %v834_v31 = vadd.f32 %v833_v9, %v1727_v44 }
 0x220   :  { %1253 = vst [vmem:[#allocation8 + $0xd8] sm:$0xff] %v1170_v8  ;;  %1106 = vmatmul.f32.gmra.mxu2 %v1685_v49  ;;  %v1835_v49 = vld [vmem:[#allocation14_spill] sm:$0xff] }
 0x221   :  { %v946_v51 = vpop.f32.mrf.mxu1  ;;  %880 = vmatmul.f32.gmra.mxu0 %v1687_v59  ;;  %v1836_v59 = vld [vmem:[#allocation15_spill] sm:$0xff] }
 0x222   :  { %v947_v18 = vadd.f32 %v946_v51, %v834_v31  ;;  %1219 = vmatmul.f32.gmra.mxu3 %v1690_v2 }
 0x223   :  { %v1059_v25 = vpop.f32.mrf.mxu2 }
 0x224   :  { %v1060_v29 = vadd.f32 %v1059_v25, %v947_v18  ;;  %993 = vmatmul.f32.gmra.mxu1 %v1833_v62 }
 0x225   :  { %v1172_v1 = vpop.f32.mrf.mxu3 }
 0x226   :  { %v1173_v35 = vadd.f32 %v1172_v1, %v1060_v29  ;;  %v836_v3 = vpop.f32.mrf.mxu0 }
 0x227   :  { %v837_v20 = vadd.f32 %v836_v3, %v1727_v44 }
 0x228   :  { %1255 = vst [vmem:[#allocation8 + $0xe8] sm:$0xff] %v1173_v35  ;;  %1109 = vmatmul.f32.gmra.mxu2 %v1834_v6 }
 0x229   :  { %v949_v46 = vpop.f32.mrf.mxu1  ;;  %883 = vmatmul.f32.gmra.mxu0 %v1835_v49 }
 0x22a   :  { %v950_v48 = vadd.f32 %v949_v46, %v837_v20  ;;  %1222 = vmatmul.f32.gmra.mxu3 %v1836_v59 }
 0x22b   :  { %v1062_v27 = vpop.f32.mrf.mxu2 }
 0x22c   :  { %v1063_v2 = vadd.f32 %v1062_v27, %v950_v48  ;;  %996 = vmatmul.f32.gmra.mxu1 %v1837_v14 }
 0x22d   :  { %v1175_v17 = vpop.f32.mrf.mxu3 }
 0x22e   :  { %v1176_v19 = vadd.f32 %v1175_v17, %v1063_v2  ;;  %v839_v21 = vpop.f32.mrf.mxu0 }
 0x22f   :  { %v840_v22 = vadd.f32 %v839_v21, %v1727_v44 }
 0x230   :  { %1257 = vst [vmem:[#allocation8 + $0xf8] sm:$0xff] %v1176_v19 }
 0x231   :  { %v952_v24 = vpop.f32.mrf.mxu1 }
 0x232   :  { %v953_v26 = vadd.f32 %v952_v24, %v840_v22 }
 0x233   :  { %v1065_v11 = vpop.f32.mrf.mxu2 }
 0x234   :  { %v1066_v30 = vadd.f32 %v1065_v11, %v953_v26 }
 0x235   :  { %v1178_v34 = vpop.f32.mrf.mxu3 }
 0x236   :  { %v1179_v37 = vadd.f32 %v1178_v34, %v1066_v30  ;;  %v842_v28 = vpop.f32.mrf.mxu0 }
 0x237   :  { %v843_v43 = vadd.f32 %v842_v28, %v1727_v44 }
 0x238   :  { %1259 = vst [vmem:[#allocation8 + $0x108] sm:$0xff] %v1179_v37 }
 0x239   :  { %v955_v61 = vpop.f32.mrf.mxu1 }
 0x23a   :  { %v956_v39 = vadd.f32 %v955_v61, %v843_v43 }
 0x23b   :  { %v1068_v54 = vpop.f32.mrf.mxu2 }
 0x23c   :  { %v1069_v52 = vadd.f32 %v1068_v54, %v956_v39 }
 0x23d   :  { %v1181_v58 = vpop.f32.mrf.mxu3 }
 0x23e   :  { %v1182_v60 = vadd.f32 %v1181_v58, %v1069_v52  ;;  %v845_v33 = vpop.f32.mrf.mxu0 }
 0x23f   :  { %v846_v63 = vadd.f32 %v845_v33, %v1727_v44 }
 0x240   :  { %1261 = vst [vmem:[#allocation8 + $0x118] sm:$0xff] %v1182_v60 }
 0x241   :  { %v958_v36 = vpop.f32.mrf.mxu1 }
 0x242   :  { %v959_v38 = vadd.f32 %v958_v36, %v846_v63 }
 0x243   :  { %v1071_v41 = vpop.f32.mrf.mxu2 }
 0x244   :  { %v1072_v7 = vadd.f32 %v1071_v41, %v959_v38 }
 0x245   :  { %v1184_v10 = vpop.f32.mrf.mxu3 }
 0x246   :  { %v1185_v12 = vadd.f32 %v1184_v10, %v1072_v7  ;;  %v848_v42 = vpop.f32.mrf.mxu0 }
 0x247   :  { %v849_v16 = vadd.f32 %v848_v42, %v1727_v44 }
 0x248   :  { %1263 = vst [vmem:[#allocation8 + $0x128] sm:$0xff] %v1185_v12 }
 0x249   :  { %v961_v13 = vpop.f32.mrf.mxu1 }
 0x24a   :  { %v962_v15 = vadd.f32 %v961_v13, %v849_v16 }
 0x24b   :  { %v1074_v5 = vpop.f32.mrf.mxu2 }
 0x24c   :  { %v1075_v32 = vadd.f32 %v1074_v5, %v962_v15 }
 0x24d   :  { %v1187_v40 = vpop.f32.mrf.mxu3 }
 0x24e   :  { %v1188_v45 = vadd.f32 %v1187_v40, %v1075_v32  ;;  %v851_v50 = vpop.f32.mrf.mxu0 }
 0x24f   :  { %v852_v47 = vadd.f32 %v851_v50, %v1727_v44 }
 0x250   :  { %1265 = vst [vmem:[#allocation8 + $0x138] sm:$0xff] %v1188_v45 }
 0x251   :  { %v964_v53 = vpop.f32.mrf.mxu1 }
 0x252   :  { %v965_v55 = vadd.f32 %v964_v53, %v852_v47 }
 0x253   :  { %v1077_v23 = vpop.f32.mrf.mxu2 }
 0x254   :  { %v1078_v56 = vadd.f32 %v1077_v23, %v965_v55 }
 0x255   :  { %v1190_v0 = vpop.f32.mrf.mxu3 }
 0x256   :  { %v1191_v4 = vadd.f32 %v1190_v0, %v1078_v56  ;;  %v854_v57 = vpop.f32.mrf.mxu0 }
 0x257   :  { %v855_v8 = vadd.f32 %v854_v57, %v1727_v44 }
 0x258   :  { %1267 = vst [vmem:[#allocation8 + $0x148] sm:$0xff] %v1191_v4 }
 0x259   :  { %v967_v9 = vpop.f32.mrf.mxu1 }
 0x25a   :  { %v968_v31 = vadd.f32 %v967_v9, %v855_v8 }
 0x25b   :  { %v1080_v51 = vpop.f32.mrf.mxu2 }
 0x25c   :  { %v1081_v18 = vadd.f32 %v1080_v51, %v968_v31 }
 0x25d   :  { %v1193_v25 = vpop.f32.mrf.mxu3 }
 0x25e   :  { %v1194_v29 = vadd.f32 %v1193_v25, %v1081_v18  ;;  %v857_v62 = vpop.f32.mrf.mxu0 }
 0x25f   :  { %v858_v1 = vadd.f32 %v857_v62, %v1727_v44 }
 0x260   :  { %1269 = vst [vmem:[#allocation8 + $0x158] sm:$0xff] %v1194_v29 }
 0x261   :  { %v970_v35 = vpop.f32.mrf.mxu1 }
 0x262   :  { %v971_v3 = vadd.f32 %v970_v35, %v858_v1 }
 0x263   :  { %v1083_v20 = vpop.f32.mrf.mxu2 }
 0x264   :  { %v1084_v6 = vadd.f32 %v1083_v20, %v971_v3 }
 0x265   :  { %v1196_v46 = vpop.f32.mrf.mxu3 }
 0x266   :  { %v1197_v49 = vadd.f32 %v1196_v46, %v1084_v6  ;;  %v860_v48 = vpop.f32.mrf.mxu0 }
 0x267   :  { %v861_v59 = vadd.f32 %v860_v48, %v1727_v44 }
 0x268   :  { %1271 = vst [vmem:[#allocation8 + $0x168] sm:$0xff] %v1197_v49 }
 0x269   :  { %v973_v27 = vpop.f32.mrf.mxu1 }
 0x26a   :  { %v974_v2 = vadd.f32 %v973_v27, %v861_v59 }
 0x26b   :  { %v1086_v14 = vpop.f32.mrf.mxu2 }
 0x26c   :  { %v1087_v17 = vadd.f32 %v1086_v14, %v974_v2 }
 0x26d   :  { %v1199_v19 = vpop.f32.mrf.mxu3 }
 0x26e   :  { %v1200_v21 = vadd.f32 %v1199_v19, %v1087_v17  ;;  %v863_v22 = vpop.f32.mrf.mxu0 }
 0x26f   :  { %v864_v24 = vadd.f32 %v863_v22, %v1727_v44 }
 0x270   :  { %1273 = vst [vmem:[#allocation8 + $0x178] sm:$0xff] %v1200_v21 }
 0x271   :  { %v976_v26 = vpop.f32.mrf.mxu1 }
 0x272   :  { %v977_v11 = vadd.f32 %v976_v26, %v864_v24 }
 0x273   :  { %v1089_v30 = vpop.f32.mrf.mxu2 }
 0x274   :  { %v1090_v34 = vadd.f32 %v1089_v30, %v977_v11 }
 0x275   :  { %v1202_v37 = vpop.f32.mrf.mxu3 }
 0x276   :  { %v1203_v28 = vadd.f32 %v1202_v37, %v1090_v34  ;;  %v866_v43 = vpop.f32.mrf.mxu0 }
 0x277   :  { %v867_v61 = vadd.f32 %v866_v43, %v1727_v44 }
 0x278   :  { %1275 = vst [vmem:[#allocation8 + $0x188] sm:$0xff] %v1203_v28 }
 0x279   :  { %v979_v39 = vpop.f32.mrf.mxu1 }
 0x27a   :  { %v980_v54 = vadd.f32 %v979_v39, %v867_v61 }
 0x27b   :  { %v1092_v52 = vpop.f32.mrf.mxu2 }
 0x27c   :  { %v1093_v58 = vadd.f32 %v1092_v52, %v980_v54 }
 0x27d   :  { %v1205_v60 = vpop.f32.mrf.mxu3 }
 0x27e   :  { %v1206_v33 = vadd.f32 %v1205_v60, %v1093_v58  ;;  %v869_v63 = vpop.f32.mrf.mxu0 }
 0x27f   :  { %v870_v36 = vadd.f32 %v869_v63, %v1727_v44 }
 0x280   :  { %1277 = vst [vmem:[#allocation8 + $0x198] sm:$0xff] %v1206_v33 }
 0x281   :  { %v982_v38 = vpop.f32.mrf.mxu1 }
 0x282   :  { %v983_v41 = vadd.f32 %v982_v38, %v870_v36 }
 0x283   :  { %v1095_v7 = vpop.f32.mrf.mxu2 }
 0x284   :  { %v1096_v10 = vadd.f32 %v1095_v7, %v983_v41 }
 0x285   :  { %v1208_v12 = vpop.f32.mrf.mxu3 }
 0x286   :  { %v1209_v42 = vadd.f32 %v1208_v12, %v1096_v10  ;;  %v872_v16 = vpop.f32.mrf.mxu0 }
 0x287   :  { %v873_v13 = vadd.f32 %v872_v16, %v1727_v44 }
 0x288   :  { %1279 = vst [vmem:[#allocation8 + $0x1a8] sm:$0xff] %v1209_v42 }
 0x289   :  { %v985_v15 = vpop.f32.mrf.mxu1 }
 0x28a   :  { %v986_v5 = vadd.f32 %v985_v15, %v873_v13 }
 0x28b   :  { %v1098_v32 = vpop.f32.mrf.mxu2 }
 0x28c   :  { %v1099_v40 = vadd.f32 %v1098_v32, %v986_v5 }
 0x28d   :  { %v1211_v45 = vpop.f32.mrf.mxu3 }
 0x28e   :  { %v1212_v50 = vadd.f32 %v1211_v45, %v1099_v40  ;;  %v875_v47 = vpop.f32.mrf.mxu0 }
 0x28f   :  { %v876_v53 = vadd.f32 %v875_v47, %v1727_v44 }
 0x290   :  { %1281 = vst [vmem:[#allocation8 + $0x1b8] sm:$0xff] %v1212_v50 }
 0x291   :  { %v988_v55 = vpop.f32.mrf.mxu1 }
 0x292   :  { %v989_v23 = vadd.f32 %v988_v55, %v876_v53 }
 0x293   :  { %v1101_v56 = vpop.f32.mrf.mxu2 }
 0x294   :  { %v1102_v0 = vadd.f32 %v1101_v56, %v989_v23 }
 0x295   :  { %v1214_v4 = vpop.f32.mrf.mxu3 }
 0x296   :  { %v1215_v57 = vadd.f32 %v1214_v4, %v1102_v0  ;;  %v878_v8 = vpop.f32.mrf.mxu0 }
 0x297   :  { %v879_v9 = vadd.f32 %v878_v8, %v1727_v44 }
 0x298   :  { %1283 = vst [vmem:[#allocation8 + $0x1c8] sm:$0xff] %v1215_v57 }
 0x299   :  { %v991_v31 = vpop.f32.mrf.mxu1 }
 0x29a   :  { %v992_v51 = vadd.f32 %v991_v31, %v879_v9 }
 0x29b   :  { %v1104_v18 = vpop.f32.mrf.mxu2 }
 0x29c   :  { %v1105_v25 = vadd.f32 %v1104_v18, %v992_v51 }
 0x29d   :  { %v1217_v29 = vpop.f32.mrf.mxu3 }
 0x29e   :  { %v1218_v62 = vadd.f32 %v1217_v29, %v1105_v25  ;;  %v881_v1 = vpop.f32.mrf.mxu0 }
 0x29f   :  { %v882_v35 = vadd.f32 %v881_v1, %v1727_v44 }
 0x2a0   :  { %1285 = vst [vmem:[#allocation8 + $0x1d8] sm:$0xff] %v1218_v62 }
 0x2a1   :  { %v994_v3 = vpop.f32.mrf.mxu1 }
 0x2a2   :  { %v995_v20 = vadd.f32 %v994_v3, %v882_v35 }
 0x2a3   :  { %v1107_v6 = vpop.f32.mrf.mxu2 }
 0x2a4   :  { %v1108_v46 = vadd.f32 %v1107_v6, %v995_v20 }
 0x2a5   :  { %v1220_v49 = vpop.f32.mrf.mxu3 }
 0x2a6   :  { %v1221_v48 = vadd.f32 %v1220_v49, %v1108_v46  ;;  %v884_v59 = vpop.f32.mrf.mxu0 }
 0x2a7   :  { %v885_v27 = vadd.f32 %v884_v59, %v1727_v44 }
 0x2a8   :  { %1287 = vst [vmem:[#allocation8 + $0x1e8] sm:$0xff] %v1221_v48 }
 0x2a9   :  { %v997_v2 = vpop.f32.mrf.mxu1 }
 0x2aa   :  { %v998_v14 = vadd.f32 %v997_v2, %v885_v27 }
 0x2ab   :  { %v1110_v17 = vpop.f32.mrf.mxu2 }
 0x2ac   :  { %v1111_v19 = vadd.f32 %v1110_v17, %v998_v14 }
 0x2ad   :  { %v1223_v21 = vpop.f32.mrf.mxu3 }
 0x2ae   :  { %v1224_v22 = vadd.f32 %v1223_v21, %v1111_v19 }
 0x2b0   :  { %1289 = vst [vmem:[#allocation8 + $0x1f8] sm:$0xff] %v1224_v22 }
 0x2b1   :  { %1302 = dma.vmem_to_hbm [thread:$0]  %s1295_s29, 8192, %s1297_s5, [#allocation4], %s1498_s20, %s1498_s20, %s1499_s21  }
 0x2b2   :  { %1495 = dma.done.wait [#allocation4], 8192  }
 0x2b3   :  { %1496 = vsyncadd [#allocation4], 4294959104 }
 0x2b4   :  { %1307 = vsyncpa [#allocation3], 1 }
 0x2b5   :  { %1308 = vsyncpa [#allocation6], 1 }
 0x2b6   :  { %1309 = vsyncpa [#allocation4], 1 }

</bundles_post_ra>
